<compile_context>
chip_gen: v7x
topology: tpu7x:2x2x1
jax: 0.10.0
libtpu: 0.0.40
codegen_flags: <defaults>
</compile_context>

<pallas_src>
import math

import numpy as np

import jax
import jax.numpy as jnp
from jax import lax
from jax.experimental import pallas as pl
from jax.experimental.pallas import tpu as pltpu


# ----------------------------- model dimensions -----------------------------

CIN, CMID, COUT = 4, 8, 8          # conv channels
H = W = 16                         # input spatial size
H1, W1 = H // 2, W // 2            # after max-pool: 8 x 8
H2, W2 = H1 // 2, W1 // 2          # after avg-pool: 4 x 4
FC_NEURONS = 32
NCLASSES = 10


# ----------------------------- fused Pallas kernel -----------------------------

def _evalnet_kernel(x_ref, b1w_ref, b1b_ref, b2w_ref, b2b_ref,
                    m1_ref, fc1b_ref, alpha_ref, fc2w_ref, fc2b_ref, out_ref):
    """Whole EvalNet forward for one batch element (grid axis = batch).

    x_ref    : (1, H+2, CIN*W)     h-zero-padded input, lane index = cin*W + w
    b1w_ref  : (3, CIN*W, CMID*W)  banded conv1 weights, one (K,N) matrix per kh tap
                                   (kw taps + "same" w-padding folded into the band)
    b1b_ref  : (1, CMID*W)         conv1 bias, tiled over w
    b2w_ref  : (3, CMID*W, COUT*W1) banded conv2 weights, reading the strided max-pooled
                                   layout (valid pooled values live on even-w lanes;
                                   odd-w lanes are zero rows and are ignored)
    b2b_ref  : (1, COUT*W1)        conv2 bias, tiled over w
    m1_ref   : (H1, COUT*W1, FC)   fused 2x2 avg-pool + NCHW flatten + fc1 weights
    fc1b_ref : (1, FC)
    alpha_ref: (1, FC)             PReLU slope broadcast to a row at init
    fc2w_ref : (FC, NCLASSES)
    fc2b_ref : (1, NCLASSES)
    out_ref  : (1, 1, NCLASSES)
    """
    f32 = jnp.float32
    x = x_ref[0]                                                     # (H+2, CIN*W)

    # ---- conv1 (3x3 "same") + bias + ReLU: 3 shifted-row MXU matmuls ----
    acc = jnp.dot(x[0:H, :], b1w_ref[0], preferred_element_type=f32)
    acc = acc + jnp.dot(x[1:H + 1, :], b1w_ref[1], preferred_element_type=f32)
    acc = acc + jnp.dot(x[2:H + 2, :], b1w_ref[2], preferred_element_type=f32)
    y1 = jnp.maximum(acc + b1b_ref[...], 0.0)                        # (16, 128) lane = c*W + w

    # ---- 2x2 max-pool, stride 2 (in-register epilogue, never leaves VMEM) ----
    # rows: pairwise max over (2h, 2h+1)
    yh = jnp.max(y1.reshape(H // 2, 2, CMID * W), axis=1)            # (8, 128)
    # cols: max of adjacent lanes; pooled values land on even-w lanes, the odd-w lanes
    # are dead and are simply multiplied by zero rows of the conv2 band matrix.
    pair = jnp.maximum(yh[:, 0:CMID * W - 1], yh[:, 1:CMID * W])     # (8, 127)
    q1 = jnp.concatenate([pair, jnp.zeros((H // 2, 1), f32)], axis=1)  # (8, 128)

    # ---- conv2 (3x3 "same") + bias + ReLU ----
    zrow = jnp.zeros((1, CMID * W), f32)
    x2 = jnp.concatenate([zrow, q1, zrow], axis=0)                   # (10, 128) h-padded
    acc2 = jnp.dot(x2[0:H1, :], b2w_ref[0], preferred_element_type=f32)
    acc2 = acc2 + jnp.dot(x2[1:H1 + 1, :], b2w_ref[1], preferred_element_type=f32)
    acc2 = acc2 + jnp.dot(x2[2:H1 + 2, :], b2w_ref[2], preferred_element_type=f32)
    y2 = jnp.maximum(acc2 + b2b_ref[...], 0.0)                       # (8, 64) lane = c*W1 + w

    # ---- 2x2 avg-pool + NCHW flatten + fc1: all linear, fused into m1 at init ----
    h = fc1b_ref[...]                                                # (1, FC)
    for r in range(H1):                                              # static unroll: 8 small dots
        h = h + jnp.dot(y2[r:r + 1, :], m1_ref[r], preferred_element_type=f32)

    # ---- PReLU ----
    h = jnp.where(h > 0.0, h, alpha_ref[...] * h)

    # ---- fc2 ----
    out = jnp.dot(h, fc2w_ref[...], preferred_element_type=f32) + fc2b_ref[...]
    out_ref[0] = out


def eval_net_forward(kparams, x_nchw):
    """Fused EvalNet forward: a single pallas_call for the whole network."""
    n, cin, hh, ww = x_nchw.shape
    assert (cin, hh, ww) == (CIN, H, W)

    # Only runtime glue: NCHW -> (N, H, CIN*W) with lane index cin*W + w, plus zero h-halo.
    x = jnp.transpose(x_nchw.astype(jnp.float32), (0, 2, 1, 3)).reshape(n, H, CIN * W)
    x = jnp.pad(x, ((0, 0), (1, 1), (0, 0)))                         # (N, H+2, CIN*W)

    out = pl.pallas_call(
        _evalnet_kernel,
        out_shape=jax.ShapeDtypeStruct((n, 1, NCLASSES), jnp.float32),
        grid=(n,),
        in_specs=[
            pl.BlockSpec((1, H + 2, CIN * W), lambda i: (i, 0, 0)),          # x (per batch)
            pl.BlockSpec((3, CIN * W, CMID * W), lambda i: (0, 0, 0)),       # conv1 band
            pl.BlockSpec((1, CMID * W), lambda i: (0, 0)),                   # conv1 bias row
            pl.BlockSpec((3, CMID * W, COUT * W1), lambda i: (0, 0, 0)),     # conv2 band
            pl.BlockSpec((1, COUT * W1), lambda i: (0, 0)),                  # conv2 bias row
            pl.BlockSpec((H1, COUT * W1, FC_NEURONS), lambda i: (0, 0, 0)),  # avgpool+fc1
            pl.BlockSpec((1, FC_NEURONS), lambda i: (0, 0)),                 # fc1 bias row
            pl.BlockSpec((1, FC_NEURONS), lambda i: (0, 0)),                 # prelu slope row
            pl.BlockSpec((FC_NEURONS, NCLASSES), lambda i: (0, 0)),          # fc2 weight
            pl.BlockSpec((1, NCLASSES), lambda i: (0, 0)),                   # fc2 bias row
        ],
        out_specs=pl.BlockSpec((1, 1, NCLASSES), lambda i: (i, 0, 0)),
        compiler_params=pltpu.CompilerParams(
            dimension_semantics=("parallel",)),   # v7x: shard batch across the 2 TCs
    )(x, kparams["b1w"], kparams["b1b"], kparams["b2w"], kparams["b2b"],
      kparams["m1"], kparams["fc1b"], kparams["alpha"],
      kparams["fc2w"], kparams["fc2b"])
    return out.reshape(n, NCLASSES)


# ----------------------------- parameters -----------------------------

def _kaiming_uniform(key, shape, fan_in, a=0.25):
    bound = math.sqrt(6.0 / ((1.0 + a * a) * fan_in))
    return jax.random.uniform(key, shape, jnp.float32, -bound, bound)


def init_params(key):
    """Canonical (PyTorch-layout) parameters, matching EvalNet's init scheme."""
    k = jax.random.split(key, 5)
    p = {}
    # init_feature_network: Kaiming-uniform(a=0.25) conv weights, zero bias (HWIO layout)
    p["conv1_w"] = _kaiming_uniform(k[0], (3, 3, CIN, CMID), fan_in=CIN * 9)
    p["conv1_b"] = jnp.zeros((CMID,), jnp.float32)
    p["conv2_w"] = _kaiming_uniform(k[1], (3, 3, CMID, COUT), fan_in=CMID * 9)
    p["conv2_b"] = jnp.zeros((COUT,), jnp.float32)
    # compute_output_channels: 16 -> ceil/2 -> 8 -> ceil/2 -> 4; channels = 4*4*COUT = 128
    channels = H2 * W2 * COUT
    # classifier[0]: Kaiming-uniform(a=0.25), zero bias; rows in NCHW-flatten order
    p["fc1_w"] = _kaiming_uniform(k[2], (channels, FC_NEURONS), fan_in=channels)
    p["fc1_b"] = jnp.zeros((FC_NEURONS,), jnp.float32)
    p["prelu_a"] = jnp.float32(0.25)
    # classifier[2]: PyTorch default Linear init
    bnd = 1.0 / math.sqrt(FC_NEURONS)
    p["fc2_w"] = jax.random.uniform(k[3], (FC_NEURONS, NCLASSES), jnp.float32, -bnd, bnd)
    p["fc2_b"] = jax.random.uniform(k[4], (NCLASSES,), jnp.float32, -bnd, bnd)
    return p


def prepare_kernel_params(p):
    """One-time host-side repack of the PyTorch-layout weights into the fused kernel's
    MXU-friendly layouts (banded conv matrices, lane-tiled biases, fused
    avgpool+flatten+fc1 tensor).  Runs once at init -- zero per-step cost."""
    conv1 = np.asarray(p["conv1_w"], np.float32)    # (3,3,CIN,CMID)  HWIO
    conv2 = np.asarray(p["conv2_w"], np.float32)    # (3,3,CMID,COUT) HWIO
    fc1w = np.asarray(p["fc1_w"], np.float32)       # rows = c*H2*W2 + h*W2 + w (NCHW flatten)

    # conv1 band: rows = input lane (cin*W + w_in), cols = output lane (cout*W + w_out).
    # kw taps and the "same" w-padding are folded in (out-of-range taps simply absent).
    b1w = np.zeros((3, CIN * W, CMID * W), np.float32)
    for kh in range(3):
        for kw in range(3):
            for wo in range(W):
                wi = wo + kw - 1
                if 0 <= wi < W:
                    for ci in range(CIN):
                        for co in range(CMID):
                            b1w[kh, ci * W + wi, co * W + wo] = conv1[kh, kw, ci, co]

    # conv2 band: reads the strided max-pooled layout (valid data at lanes cin*W + 2*w_in,
    # odd-w lanes are zero rows), writes lane (cout*W1 + w_out).
    b2w = np.zeros((3, CMID * W, COUT * W1), np.float32)
    for kh in range(3):
        for kw in range(3):
            for wo in range(W1):
                wi = wo + kw - 1
                if 0 <= wi < W1:
                    for ci in range(CMID):
                        for co in range(COUT):
                            b2w[kh, ci * W + 2 * wi, co * W1 + wo] = conv2[kh, kw, ci, co]

    b1b = np.repeat(np.asarray(p["conv1_b"], np.float32), W).reshape(1, CMID * W)
    b2b = np.repeat(np.asarray(p["conv2_b"], np.float32), W1).reshape(1, COUT * W1)

    # Fused 2x2 avg-pool + PyTorch NCHW flatten + fc1:   fc1_out = sum_r y2[r] @ m1[r]
    m1 = np.zeros((H1, COUT * W1, FC_NEURONS), np.float32)
    for r in range(H1):
        for c in range(COUT):
            for w2 in range(W1):
                m1[r, c * W1 + w2, :] = 0.25 * fc1w[c * (H2 * W2) + (r // 2) * W2 + (w2 // 2), :]

    return {
        "b1w": jnp.asarray(b1w), "b1b": jnp.asarray(b1b),
        "b2w": jnp.asarray(b2w), "b2b": jnp.asarray(b2b),
        "m1": jnp.asarray(m1),
        "fc1b": jnp.asarray(p["fc1_b"], jnp.float32).reshape(1, FC_NEURONS),
        "alpha": jnp.full((1, FC_NEURONS), p["prelu_a"], jnp.float32),
        "fc2w": jnp.asarray(p["fc2_w"], jnp.float32),
        "fc2b": jnp.asarray(p["fc2_b"], jnp.float32).reshape(1, NCLASSES),
    }


# ----------------------------- pure-JAX reference -----------------------------

def reference_forward(params, x_nchw):
    x = jnp.transpose(x_nchw, (0, 2, 3, 1)).astype(jnp.float32)      # NHWC

    def conv(x, w, b):
        y = lax.conv_general_dilated(x, w, (1, 1), "SAME",
                                     dimension_numbers=("NHWC", "HWIO", "NHWC"))
        return jax.nn.relu(y + b)

    def pool(x, mode):
        n, h, w, c = x.shape
        xw = x.reshape(n, h // 2, 2, w // 2, 2, c)
        return xw.max(axis=(2, 4)) if mode == "max" else xw.mean(axis=(2, 4))

    x = conv(x, params["conv1_w"], params["conv1_b"])
    x = pool(x, "max")
    x = conv(x, params["conv2_w"], params["conv2_b"])
    x = pool(x, "avg")
    flat = jnp.transpose(x, (0, 3, 1, 2)).reshape(x.shape[0], -1)     # NCHW flatten (PyTorch)
    h = flat @ params["fc1_w"] + params["fc1_b"]
    h = jnp.where(h > 0, h, params["prelu_a"] * h)
    return h @ params["fc2_w"] + params["fc2_b"]


if __name__ == "__main__":
    key = jax.random.PRNGKey(0)
    pkey, xkey = jax.random.split(key)
    params = init_params(pkey)
    kparams = prepare_kernel_params(params)          # one-time weight repack (not per-step)
    x = jax.random.normal(xkey, (2, CIN, H, W), jnp.float32)   # NCHW, like PyTorch

    fwd = jax.jit(eval_net_forward)
    out = jax.block_until_ready(fwd(kparams, x))

    ref = reference_forward(params, x)
    assert out.shape == (2, NCLASSES), out.shape
    err = float(jnp.max(jnp.abs(out - ref)))
    assert jnp.allclose(out, ref, atol=1e-4, rtol=1e-4), err
    print("KERNEL_OK")
</pallas_src>

<mosaic_0001>
module attributes {stable_mosaic.version = 11 : i64} {
  func.func @_evalnet_kernel(%arg0: i32, %arg1: memref<1x18x64xf32, #tpu.memory_space<vmem>>, %arg2: memref<3x64x128xf32, #tpu.memory_space<vmem>>, %arg3: memref<1x128xf32, #tpu.memory_space<vmem>>, %arg4: memref<3x128x64xf32, #tpu.memory_space<vmem>>, %arg5: memref<1x64xf32, #tpu.memory_space<vmem>>, %arg6: memref<8x64x32xf32, #tpu.memory_space<vmem>>, %arg7: memref<1x32xf32, #tpu.memory_space<vmem>>, %arg8: memref<1x32xf32, #tpu.memory_space<vmem>>, %arg9: memref<32x10xf32, #tpu.memory_space<vmem>>, %arg10: memref<1x10xf32, #tpu.memory_space<vmem>>, %arg11: memref<1x1x10xf32, #tpu.memory_space<vmem>>) attributes {dimension_semantics = [#tpu.dimension_semantics<parallel>], iteration_bounds = array<i64: 2>, scalar_prefetch = 0 : i64, scratch_operands = 0 : i64, tpu.core_type = #tpu.core_type<tc>, window_params = [{transform_indices = @transform_0, window_bounds = array<i64: 1, 18, 64>}, {pipeline_mode = #tpu.pipeline_mode<synchronous>, transform_indices = @transform_1, window_bounds = array<i64: 3, 64, 128>}, {pipeline_mode = #tpu.pipeline_mode<synchronous>, transform_indices = @transform_2, window_bounds = array<i64: 1, 128>}, {pipeline_mode = #tpu.pipeline_mode<synchronous>, transform_indices = @transform_3, window_bounds = array<i64: 3, 128, 64>}, {pipeline_mode = #tpu.pipeline_mode<synchronous>, transform_indices = @transform_4, window_bounds = array<i64: 1, 64>}, {pipeline_mode = #tpu.pipeline_mode<synchronous>, transform_indices = @transform_5, window_bounds = array<i64: 8, 64, 32>}, {pipeline_mode = #tpu.pipeline_mode<synchronous>, transform_indices = @transform_6, window_bounds = array<i64: 1, 32>}, {pipeline_mode = #tpu.pipeline_mode<synchronous>, transform_indices = @transform_7, window_bounds = array<i64: 1, 32>}, {pipeline_mode = #tpu.pipeline_mode<synchronous>, transform_indices = @transform_8, window_bounds = array<i64: 32, 10>}, {pipeline_mode = #tpu.pipeline_mode<synchronous>, transform_indices = @transform_9, window_bounds = array<i64: 1, 10>}, {transform_indices = @transform_10, window_bounds = array<i64: 1, 1, 10>}]} {
    %c0 = arith.constant 0 : index
    %c0_0 = arith.constant 0 : index
    %c0_1 = arith.constant 0 : index
    %0 = vector.load %arg1[%c0, %c0_0, %c0_1] : memref<1x18x64xf32, #tpu.memory_space<vmem>>, vector<1x18x64xf32>
    %1 = vector.shape_cast %0 : vector<1x18x64xf32> to vector<18x64xf32>
    %2 = vector.extract_strided_slice %1 {offsets = [0, 0], sizes = [16, 64], strides = [1, 1]} : vector<18x64xf32> to vector<16x64xf32>
    %c0_2 = arith.constant 0 : index
    %c0_3 = arith.constant 0 : index
    %c0_4 = arith.constant 0 : index
    %3 = vector.load %arg2[%c0_2, %c0_3, %c0_4] : memref<3x64x128xf32, #tpu.memory_space<vmem>>, vector<1x64x128xf32>
    %4 = vector.shape_cast %3 : vector<1x64x128xf32> to vector<64x128xf32>
    %cst = arith.constant dense<0.000000e+00> : vector<16x128xf32>
    %5 = tpu.matmul %2, %4, %cst {dimension_numbers = #tpu.dot_dimension_numbers<[1], [0], [0], [1], [0, 0, 1, 1], [], []>} : vector<16x64xf32>, vector<64x128xf32>, vector<16x128xf32> -> vector<16x128xf32>
    %6 = vector.extract_strided_slice %1 {offsets = [1, 0], sizes = [16, 64], strides = [1, 1]} : vector<18x64xf32> to vector<16x64xf32>
    %c1 = arith.constant 1 : index
    %c0_5 = arith.constant 0 : index
    %c0_6 = arith.constant 0 : index
    %7 = vector.load %arg2[%c1, %c0_5, %c0_6] : memref<3x64x128xf32, #tpu.memory_space<vmem>>, vector<1x64x128xf32>
    %8 = vector.shape_cast %7 : vector<1x64x128xf32> to vector<64x128xf32>
    %cst_7 = arith.constant dense<0.000000e+00> : vector<16x128xf32>
    %9 = tpu.matmul %6, %8, %cst_7 {dimension_numbers = #tpu.dot_dimension_numbers<[1], [0], [0], [1], [0, 0, 1, 1], [], []>} : vector<16x64xf32>, vector<64x128xf32>, vector<16x128xf32> -> vector<16x128xf32>
    %10 = arith.addf %5, %9 : vector<16x128xf32>
    %11 = vector.extract_strided_slice %1 {offsets = [2, 0], sizes = [16, 64], strides = [1, 1]} : vector<18x64xf32> to vector<16x64xf32>
    %c2 = arith.constant 2 : index
    %c0_8 = arith.constant 0 : index
    %c0_9 = arith.constant 0 : index
    %12 = vector.load %arg2[%c2, %c0_8, %c0_9] : memref<3x64x128xf32, #tpu.memory_space<vmem>>, vector<1x64x128xf32>
    %13 = vector.shape_cast %12 : vector<1x64x128xf32> to vector<64x128xf32>
    %cst_10 = arith.constant dense<0.000000e+00> : vector<16x128xf32>
    %14 = tpu.matmul %11, %13, %cst_10 {dimension_numbers = #tpu.dot_dimension_numbers<[1], [0], [0], [1], [0, 0, 1, 1], [], []>} : vector<16x64xf32>, vector<64x128xf32>, vector<16x128xf32> -> vector<16x128xf32>
    %15 = arith.addf %10, %14 : vector<16x128xf32>
    %c0_11 = arith.constant 0 : index
    %c0_12 = arith.constant 0 : index
    %16 = vector.load %arg3[%c0_11, %c0_12] : memref<1x128xf32, #tpu.memory_space<vmem>>, vector<1x128xf32>
    %17 = vector.broadcast %16 : vector<1x128xf32> to vector<16x128xf32>
    %18 = arith.addf %15, %17 : vector<16x128xf32>
    %cst_13 = arith.constant 0.000000e+00 : f32
    %19 = vector.broadcast %cst_13 : f32 to vector<16x128xf32>
    %20 = arith.maximumf %18, %19 : vector<16x128xf32>
    %21 = vector.shape_cast %20 : vector<16x128xf32> to vector<8x2x128xf32>
    %cst_14 = arith.constant dense<0xFF800000> : vector<8x128xf32>
    %22 = vector.multi_reduction <maximumf>, %21, %cst_14 [1] : vector<8x2x128xf32> to vector<8x128xf32>
    %23 = vector.extract_strided_slice %22 {offsets = [0, 0], sizes = [8, 127], strides = [1, 1]} : vector<8x128xf32> to vector<8x127xf32>
    %24 = vector.extract_strided_slice %22 {offsets = [0, 1], sizes = [8, 127], strides = [1, 1]} : vector<8x128xf32> to vector<8x127xf32>
    %25 = arith.maximumf %23, %24 : vector<8x127xf32>
    %cst_15 = arith.constant 0.000000e+00 : f32
    %26 = vector.broadcast %cst_15 : f32 to vector<8x1xf32>
    %27 = tpu.concatenate %25, %26 in 1 : vector<8x127xf32>, vector<8x1xf32> -> vector<8x128xf32>
    %cst_16 = arith.constant 0.000000e+00 : f32
    %28 = vector.broadcast %cst_16 : f32 to vector<1x128xf32>
    %29 = tpu.concatenate %28, %27, %28 in 0 : vector<1x128xf32>, vector<8x128xf32>, vector<1x128xf32> -> vector<10x128xf32>
    %30 = vector.extract_strided_slice %29 {offsets = [0, 0], sizes = [8, 128], strides = [1, 1]} : vector<10x128xf32> to vector<8x128xf32>
    %c0_17 = arith.constant 0 : index
    %c0_18 = arith.constant 0 : index
    %c0_19 = arith.constant 0 : index
    %31 = vector.load %arg4[%c0_17, %c0_18, %c0_19] : memref<3x128x64xf32, #tpu.memory_space<vmem>>, vector<1x128x64xf32>
    %32 = vector.shape_cast %31 : vector<1x128x64xf32> to vector<128x64xf32>
    %cst_20 = arith.constant dense<0.000000e+00> : vector<8x64xf32>
    %33 = tpu.matmul %30, %32, %cst_20 {dimension_numbers = #tpu.dot_dimension_numbers<[1], [0], [0], [1], [0, 0, 1, 1], [], []>} : vector<8x128xf32>, vector<128x64xf32>, vector<8x64xf32> -> vector<8x64xf32>
    %34 = vector.extract_strided_slice %29 {offsets = [1, 0], sizes = [8, 128], strides = [1, 1]} : vector<10x128xf32> to vector<8x128xf32>
    %c1_21 = arith.constant 1 : index
    %c0_22 = arith.constant 0 : index
    %c0_23 = arith.constant 0 : index
    %35 = vector.load %arg4[%c1_21, %c0_22, %c0_23] : memref<3x128x64xf32, #tpu.memory_space<vmem>>, vector<1x128x64xf32>
    %36 = vector.shape_cast %35 : vector<1x128x64xf32> to vector<128x64xf32>
    %cst_24 = arith.constant dense<0.000000e+00> : vector<8x64xf32>
    %37 = tpu.matmul %34, %36, %cst_24 {dimension_numbers = #tpu.dot_dimension_numbers<[1], [0], [0], [1], [0, 0, 1, 1], [], []>} : vector<8x128xf32>, vector<128x64xf32>, vector<8x64xf32> -> vector<8x64xf32>
    %38 = arith.addf %33, %37 : vector<8x64xf32>
    %39 = vector.extract_strided_slice %29 {offsets = [2, 0], sizes = [8, 128], strides = [1, 1]} : vector<10x128xf32> to vector<8x128xf32>
    %c2_25 = arith.constant 2 : index
    %c0_26 = arith.constant 0 : index
    %c0_27 = arith.constant 0 : index
    %40 = vector.load %arg4[%c2_25, %c0_26, %c0_27] : memref<3x128x64xf32, #tpu.memory_space<vmem>>, vector<1x128x64xf32>
    %41 = vector.shape_cast %40 : vector<1x128x64xf32> to vector<128x64xf32>
    %cst_28 = arith.constant dense<0.000000e+00> : vector<8x64xf32>
    %42 = tpu.matmul %39, %41, %cst_28 {dimension_numbers = #tpu.dot_dimension_numbers<[1], [0], [0], [1], [0, 0, 1, 1], [], []>} : vector<8x128xf32>, vector<128x64xf32>, vector<8x64xf32> -> vector<8x64xf32>
    %43 = arith.addf %38, %42 : vector<8x64xf32>
    %c0_29 = arith.constant 0 : index
    %c0_30 = arith.constant 0 : index
    %44 = vector.load %arg5[%c0_29, %c0_30] : memref<1x64xf32, #tpu.memory_space<vmem>>, vector<1x64xf32>
    %45 = vector.broadcast %44 : vector<1x64xf32> to vector<8x64xf32>
    %46 = arith.addf %43, %45 : vector<8x64xf32>
    %cst_31 = arith.constant 0.000000e+00 : f32
    %47 = vector.broadcast %cst_31 : f32 to vector<8x64xf32>
    %48 = arith.maximumf %46, %47 : vector<8x64xf32>
    %c0_32 = arith.constant 0 : index
    %c0_33 = arith.constant 0 : index
    %49 = vector.load %arg7[%c0_32, %c0_33] : memref<1x32xf32, #tpu.memory_space<vmem>>, vector<1x32xf32>
    %50 = vector.extract_strided_slice %48 {offsets = [0, 0], sizes = [1, 64], strides = [1, 1]} : vector<8x64xf32> to vector<1x64xf32>
    %c0_34 = arith.constant 0 : index
    %c0_35 = arith.constant 0 : index
    %c0_36 = arith.constant 0 : index
    %51 = vector.load %arg6[%c0_34, %c0_35, %c0_36] : memref<8x64x32xf32, #tpu.memory_space<vmem>>, vector<1x64x32xf32>
    %52 = vector.shape_cast %51 : vector<1x64x32xf32> to vector<64x32xf32>
    %cst_37 = arith.constant dense<0.000000e+00> : vector<1x32xf32>
    %53 = tpu.matmul %50, %52, %cst_37 {dimension_numbers = #tpu.dot_dimension_numbers<[1], [0], [0], [1], [0, 0, 1, 1], [], []>} : vector<1x64xf32>, vector<64x32xf32>, vector<1x32xf32> -> vector<1x32xf32>
    %54 = arith.addf %49, %53 : vector<1x32xf32>
    %55 = vector.extract_strided_slice %48 {offsets = [1, 0], sizes = [1, 64], strides = [1, 1]} : vector<8x64xf32> to vector<1x64xf32>
    %c1_38 = arith.constant 1 : index
    %c0_39 = arith.constant 0 : index
    %c0_40 = arith.constant 0 : index
    %56 = vector.load %arg6[%c1_38, %c0_39, %c0_40] : memref<8x64x32xf32, #tpu.memory_space<vmem>>, vector<1x64x32xf32>
    %57 = vector.shape_cast %56 : vector<1x64x32xf32> to vector<64x32xf32>
    %cst_41 = arith.constant dense<0.000000e+00> : vector<1x32xf32>
    %58 = tpu.matmul %55, %57, %cst_41 {dimension_numbers = #tpu.dot_dimension_numbers<[1], [0], [0], [1], [0, 0, 1, 1], [], []>} : vector<1x64xf32>, vector<64x32xf32>, vector<1x32xf32> -> vector<1x32xf32>
    %59 = arith.addf %54, %58 : vector<1x32xf32>
    %60 = vector.extract_strided_slice %48 {offsets = [2, 0], sizes = [1, 64], strides = [1, 1]} : vector<8x64xf32> to vector<1x64xf32>
    %c2_42 = arith.constant 2 : index
    %c0_43 = arith.constant 0 : index
    %c0_44 = arith.constant 0 : index
    %61 = vector.load %arg6[%c2_42, %c0_43, %c0_44] : memref<8x64x32xf32, #tpu.memory_space<vmem>>, vector<1x64x32xf32>
    %62 = vector.shape_cast %61 : vector<1x64x32xf32> to vector<64x32xf32>
    %cst_45 = arith.constant dense<0.000000e+00> : vector<1x32xf32>
    %63 = tpu.matmul %60, %62, %cst_45 {dimension_numbers = #tpu.dot_dimension_numbers<[1], [0], [0], [1], [0, 0, 1, 1], [], []>} : vector<1x64xf32>, vector<64x32xf32>, vector<1x32xf32> -> vector<1x32xf32>
    %64 = arith.addf %59, %63 : vector<1x32xf32>
    %65 = vector.extract_strided_slice %48 {offsets = [3, 0], sizes = [1, 64], strides = [1, 1]} : vector<8x64xf32> to vector<1x64xf32>
    %c3 = arith.constant 3 : index
    %c0_46 = arith.constant 0 : index
    %c0_47 = arith.constant 0 : index
    %66 = vector.load %arg6[%c3, %c0_46, %c0_47] : memref<8x64x32xf32, #tpu.memory_space<vmem>>, vector<1x64x32xf32>
    %67 = vector.shape_cast %66 : vector<1x64x32xf32> to vector<64x32xf32>
    %cst_48 = arith.constant dense<0.000000e+00> : vector<1x32xf32>
    %68 = tpu.matmul %65, %67, %cst_48 {dimension_numbers = #tpu.dot_dimension_numbers<[1], [0], [0], [1], [0, 0, 1, 1], [], []>} : vector<1x64xf32>, vector<64x32xf32>, vector<1x32xf32> -> vector<1x32xf32>
    %69 = arith.addf %64, %68 : vector<1x32xf32>
    %70 = vector.extract_strided_slice %48 {offsets = [4, 0], sizes = [1, 64], strides = [1, 1]} : vector<8x64xf32> to vector<1x64xf32>
    %c4 = arith.constant 4 : index
    %c0_49 = arith.constant 0 : index
    %c0_50 = arith.constant 0 : index
    %71 = vector.load %arg6[%c4, %c0_49, %c0_50] : memref<8x64x32xf32, #tpu.memory_space<vmem>>, vector<1x64x32xf32>
    %72 = vector.shape_cast %71 : vector<1x64x32xf32> to vector<64x32xf32>
    %cst_51 = arith.constant dense<0.000000e+00> : vector<1x32xf32>
    %73 = tpu.matmul %70, %72, %cst_51 {dimension_numbers = #tpu.dot_dimension_numbers<[1], [0], [0], [1], [0, 0, 1, 1], [], []>} : vector<1x64xf32>, vector<64x32xf32>, vector<1x32xf32> -> vector<1x32xf32>
    %74 = arith.addf %69, %73 : vector<1x32xf32>
    %75 = vector.extract_strided_slice %48 {offsets = [5, 0], sizes = [1, 64], strides = [1, 1]} : vector<8x64xf32> to vector<1x64xf32>
    %c5 = arith.constant 5 : index
    %c0_52 = arith.constant 0 : index
    %c0_53 = arith.constant 0 : index
    %76 = vector.load %arg6[%c5, %c0_52, %c0_53] : memref<8x64x32xf32, #tpu.memory_space<vmem>>, vector<1x64x32xf32>
    %77 = vector.shape_cast %76 : vector<1x64x32xf32> to vector<64x32xf32>
    %cst_54 = arith.constant dense<0.000000e+00> : vector<1x32xf32>
    %78 = tpu.matmul %75, %77, %cst_54 {dimension_numbers = #tpu.dot_dimension_numbers<[1], [0], [0], [1], [0, 0, 1, 1], [], []>} : vector<1x64xf32>, vector<64x32xf32>, vector<1x32xf32> -> vector<1x32xf32>
    %79 = arith.addf %74, %78 : vector<1x32xf32>
    %80 = vector.extract_strided_slice %48 {offsets = [6, 0], sizes = [1, 64], strides = [1, 1]} : vector<8x64xf32> to vector<1x64xf32>
    %c6 = arith.constant 6 : index
    %c0_55 = arith.constant 0 : index
    %c0_56 = arith.constant 0 : index
    %81 = vector.load %arg6[%c6, %c0_55, %c0_56] : memref<8x64x32xf32, #tpu.memory_space<vmem>>, vector<1x64x32xf32>
    %82 = vector.shape_cast %81 : vector<1x64x32xf32> to vector<64x32xf32>
    %cst_57 = arith.constant dense<0.000000e+00> : vector<1x32xf32>
    %83 = tpu.matmul %80, %82, %cst_57 {dimension_numbers = #tpu.dot_dimension_numbers<[1], [0], [0], [1], [0, 0, 1, 1], [], []>} : vector<1x64xf32>, vector<64x32xf32>, vector<1x32xf32> -> vector<1x32xf32>
    %84 = arith.addf %79, %83 : vector<1x32xf32>
    %85 = vector.extract_strided_slice %48 {offsets = [7, 0], sizes = [1, 64], strides = [1, 1]} : vector<8x64xf32> to vector<1x64xf32>
    %c7 = arith.constant 7 : index
    %c0_58 = arith.constant 0 : index
    %c0_59 = arith.constant 0 : index
    %86 = vector.load %arg6[%c7, %c0_58, %c0_59] : memref<8x64x32xf32, #tpu.memory_space<vmem>>, vector<1x64x32xf32>
    %87 = vector.shape_cast %86 : vector<1x64x32xf32> to vector<64x32xf32>
    %cst_60 = arith.constant dense<0.000000e+00> : vector<1x32xf32>
    %88 = tpu.matmul %85, %87, %cst_60 {dimension_numbers = #tpu.dot_dimension_numbers<[1], [0], [0], [1], [0, 0, 1, 1], [], []>} : vector<1x64xf32>, vector<64x32xf32>, vector<1x32xf32> -> vector<1x32xf32>
    %89 = arith.addf %84, %88 : vector<1x32xf32>
    %cst_61 = arith.constant 0.000000e+00 : f32
    %90 = vector.broadcast %cst_61 : f32 to vector<1x32xf32>
    %91 = arith.cmpf ogt, %89, %90 : vector<1x32xf32>
    %c0_62 = arith.constant 0 : index
    %c0_63 = arith.constant 0 : index
    %92 = vector.load %arg8[%c0_62, %c0_63] : memref<1x32xf32, #tpu.memory_space<vmem>>, vector<1x32xf32>
    %93 = arith.mulf %92, %89 : vector<1x32xf32>
    %94 = arith.select %91, %89, %93 : vector<1x32xi1>, vector<1x32xf32>
    %c0_64 = arith.constant 0 : index
    %c0_65 = arith.constant 0 : index
    %95 = vector.load %arg9[%c0_64, %c0_65] : memref<32x10xf32, #tpu.memory_space<vmem>>, vector<32x10xf32>
    %cst_66 = arith.constant dense<0.000000e+00> : vector<1x10xf32>
    %96 = tpu.matmul %94, %95, %cst_66 {dimension_numbers = #tpu.dot_dimension_numbers<[1], [0], [0], [1], [0, 0, 1, 1], [], []>} : vector<1x32xf32>, vector<32x10xf32>, vector<1x10xf32> -> vector<1x10xf32>
    %c0_67 = arith.constant 0 : index
    %c0_68 = arith.constant 0 : index
    %97 = vector.load %arg10[%c0_67, %c0_68] : memref<1x10xf32, #tpu.memory_space<vmem>>, vector<1x10xf32>
    %98 = arith.addf %96, %97 : vector<1x10xf32>
    %c0_69 = arith.constant 0 : index
    %c0_70 = arith.constant 0 : index
    %c0_71 = arith.constant 0 : index
    %99 = vector.load %arg11[%c0_69, %c0_70, %c0_71] : memref<1x1x10xf32, #tpu.memory_space<vmem>>, vector<1x1x10xf32>
    %100 = vector.shape_cast %99 : vector<1x1x10xf32> to vector<1x10xf32>
    %101 = vector.shape_cast %98 : vector<1x10xf32> to vector<1x1x10xf32>
    tpu.vector_store %arg11[%c0_69, %c0_70, %c0_71], %101 {strides = array<i32>} : memref<1x1x10xf32, #tpu.memory_space<vmem>>, vector<1x1x10xf32>,
    return
  }
  func.func @transform_0(%arg0: i32) -> (i32, i32, i32) {
    %c0_i32 = arith.constant 0 : i32
    %c0_i32_0 = arith.constant 0 : i32
    %c0_i32_1 = arith.constant 0 : i32
    return %arg0, %c0_i32, %c0_i32_0 : i32, i32, i32
  }
  func.func @transform_1(%arg0: i32) -> (i32, i32, i32) {
    %c0_i32 = arith.constant 0 : i32
    %c0_i32_0 = arith.constant 0 : i32
    %c0_i32_1 = arith.constant 0 : i32
    %c0_i32_2 = arith.constant 0 : i32
    return %c0_i32, %c0_i32_0, %c0_i32_1 : i32, i32, i32
  }
  func.func @transform_2(%arg0: i32) -> (i32, i32) {
    %c0_i32 = arith.constant 0 : i32
    %c0_i32_0 = arith.constant 0 : i32
    %c0_i32_1 = arith.constant 0 : i32
    return %c0_i32, %c0_i32_0 : i32, i32
  }
  func.func @transform_3(%arg0: i32) -> (i32, i32, i32) {
    %c0_i32 = arith.constant 0 : i32
    %c0_i32_0 = arith.constant 0 : i32
    %c0_i32_1 = arith.constant 0 : i32
    %c0_i32_2 = arith.constant 0 : i32
    return %c0_i32, %c0_i32_0, %c0_i32_1 : i32, i32, i32
  }
  func.func @transform_4(%arg0: i32) -> (i32, i32) {
    %c0_i32 = arith.constant 0 : i32
    %c0_i32_0 = arith.constant 0 : i32
    %c0_i32_1 = arith.constant 0 : i32
    return %c0_i32, %c0_i32_0 : i32, i32
  }
  func.func @transform_5(%arg0: i32) -> (i32, i32, i32) {
    %c0_i32 = arith.constant 0 : i32
    %c0_i32_0 = arith.constant 0 : i32
    %c0_i32_1 = arith.constant 0 : i32
    %c0_i32_2 = arith.constant 0 : i32
    return %c0_i32, %c0_i32_0, %c0_i32_1 : i32, i32, i32
  }
  func.func @transform_6(%arg0: i32) -> (i32, i32) {
    %c0_i32 = arith.constant 0 : i32
    %c0_i32_0 = arith.constant 0 : i32
    %c0_i32_1 = arith.constant 0 : i32
    return %c0_i32, %c0_i32_0 : i32, i32
  }
  func.func @transform_7(%arg0: i32) -> (i32, i32) {
    %c0_i32 = arith.constant 0 : i32
    %c0_i32_0 = arith.constant 0 : i32
    %c0_i32_1 = arith.constant 0 : i32
    return %c0_i32, %c0_i32_0 : i32, i32
  }
  func.func @transform_8(%arg0: i32) -> (i32, i32) {
    %c0_i32 = arith.constant 0 : i32
    %c0_i32_0 = arith.constant 0 : i32
    %c0_i32_1 = arith.constant 0 : i32
    return %c0_i32, %c0_i32_0 : i32, i32
  }
  func.func @transform_9(%arg0: i32) -> (i32, i32) {
    %c0_i32 = arith.constant 0 : i32
    %c0_i32_0 = arith.constant 0 : i32
    %c0_i32_1 = arith.constant 0 : i32
    return %c0_i32, %c0_i32_0 : i32, i32
  }
  func.func @transform_10(%arg0: i32) -> (i32, i32, i32) {
    %c0_i32 = arith.constant 0 : i32
    %c0_i32_0 = arith.constant 0 : i32
    %c0_i32_1 = arith.constant 0 : i32
    return %arg0, %c0_i32, %c0_i32_0 : i32, i32, i32
  }
}

</mosaic_0001>

<bundles_post_ra>
// kernel: eval_net_forward.1
= control target key start
LH: loop header
LB: loop body
LE: loop exit
PB: predicated region body
PF: predicated region fallthrough
CT: control target
= control target key end

     0   :  { %15 = vsyncpa [#allocation3], 0  ;;  %s3648_s0 = inlined_call_operand.vmem [shape: f32[2,18,64], index: 0, kind: input, shape index: {}]   ;;  %s3649_s1 = inlined_call_operand.vmem [shape: f32[3,64,128], index: 1, kind: input, shape index: {}]   ;;  %s3650_s2 = inlined_call_operand.vmem [shape: f32[1,128], index: 2, kind: input, shape index: {}]   ;;  %s3651_s3 = inlined_call_operand.vmem [shape: f32[3,128,64], index: 3, kind: input, shape index: {}]   ;;  %s3652_s4 = inlined_call_operand.vmem [shape: f32[1,64], index: 4, kind: input, shape index: {}]   ;;  %s3653_s5 = inlined_call_operand.vmem [shape: f32[8,64,32], index: 5, kind: input, shape index: {}]   ;;  %s3654_s6 = inlined_call_operand.vmem [shape: f32[1,32], index: 6, kind: input, shape index: {}]   ;;  %s3655_s7 = inlined_call_operand.vmem [shape: f32[1,32], index: 7, kind: input, shape index: {}]   ;;  %s3656_s8 = inlined_call_operand.vmem [shape: f32[32,10], index: 8, kind: input, shape index: {}]   ;;  %s3657_s9 = inlined_call_operand.vmem [shape: f32[1,10], index: 9, kind: input, shape index: {}]   ;;  %s3658_s10 = inlined_call_operand.hbm [shape: f32[2,1,10], index: 10, kind: output, shape index: {}]  }
   0x1   :  { %17 = vsyncpa [#allocation3 + $0x1], 0  ;;  %s2952_s13 = smov 0   ;;  %s2954_s14 = smov 0  }
   0x2   :  { %s2956_s15 = smov 0   ;;  %s2958_s16 = smov 0  }
   0x3 LB: > { %s2973_s17 = sadd.s32 4294967295, %s2889_s16   ;;  %s1928_s18 = sadd.s32 4294967294, %s2889_s16   ;;  %s2889_s16 = sphi %s2958_s16, %s3664_s16   ;;  %s2885_s15 = sphi %s2956_s15, %s3663_s15   ;;  %s2881_s14 = sphi %s2954_s14, %s3662_s14   ;;  %s2877_s13 = sphi %s2952_s13, %s3661_s13  }
   0x4   : > { %s2977_s19 = sadd.s32 1, %s2889_s16   ;;  %s245_s20 = sadd.s32 1, %s2885_s15 }
   0x5   : > { %s242_s21 = ssub.s32 %s2889_s16, %s2977_s19  ;;  %p255_p0 = scmp.ne.s32.totalorder %s2885_s15, %s2881_s14 }
   0x6   : > { %p243_p1 = scmp.eq.s32.totalorder %s242_s21, 0  ;;  %p256_p2 = scmp.eq.s32.totalorder %s2973_s17, 1 }
   0x7   : > { %p261_p3 = scmp.ne.s32.totalorder %s2881_s14, %s2877_s13  ;;  %p262_p4 = scmp.eq.s32.totalorder %s1928_s18, 1 }
   0x8   : > { %s2988_s22 = scalar_select %p243_p1, %s2885_s15, %s245_s20  }
   0x9   : > { %p2990_p5 = por %p256_p2, %p255_p0  ;;  %p2994_p6 = por %p262_p4, %p261_p3 }
   0xa   : > { %p1931_p7 = scmp.ge.s32.totalorder %s2889_s16, 1  ;;  %p315_p8 = scmp.lt.s32.totalorder %s2889_s16, 3 }
   0xc   : > { %p316_p9 = pnand %p1931_p7, %p315_p8 }
   0xd   : > { %v1933_v0 = vld [vmem:[%s3649_s1 + $0x40] sm:$0xff] (!%p316_p9)  ;;  %v1934_v1 = vld [vmem:[%s3649_s1 + $0x48] sm:$0xff] (!%p316_p9)  ;;  %v1935_v2 = vld [vmem:[%s3649_s1 + $0x50] sm:$0xff] (!%p316_p9)  ;;  %p352_p10 = scmp.lt.s32.totalorder (!%p316_p9), %s2973_s17, 1  ;;  %vm380_vm0 = vcmask (!%p316_p9), 1046528   ;;  %vm386_vm1 = vcmask (!%p316_p9), 523264  }
   0xe   : > { %319 = sbr.rel (%p316_p9) target bundleno = 1229 (0x4cd), region = 60  ;;  %v2542_v3 = vpack.c.bf16 (!%p316_p9), %v1934_v1, %v1933_v0  ;;  %v1936_v4 = vld [vmem:[%s3649_s1 + $0x58] sm:$0xff] (!%p316_p9)  ;;  %v1937_v6 = vld [vmem:[%s3649_s1 + $0x60] sm:$0xff] (!%p316_p9)  ;;  %v1938_v7 = vld [vmem:[%s3649_s1 + $0x68] sm:$0xff] (!%p316_p9)  ;;  %vm554_vm2 = vcmask (!%p316_p9), 1045504   ;;  %v2891_v52 = vmov (!%p316_p9), 0.0|0.0  }
   0xf   : > { %v2546_v5 = vpack.c.bf16 (!%p316_p9), %v1936_v4, %v1935_v2  ;;  %v2550_v8 = vpack.c.bf16 (!%p316_p9), %v1938_v7, %v1937_v6  ;;  %v1939_v9 = vld [vmem:[%s3649_s1 + $0x70] sm:$0xff] (!%p316_p9)  ;;  %v1940_v10 = vld [vmem:[%s3649_s1 + $0x78] sm:$0xff] (!%p316_p9)  ;;  %v360_v18 = vld [vmem:[%s3649_s1] sm:$0xff] (!%p316_p9)  ;;  %2614 = vmatprep.subr.bf16.mxu1 (!%p316_p9), %v2891_v52  ;;  %v2892_v1 = vmov (!%p316_p9), 1983009808   ;;  %vm696_vm3 = vcmask (!%p316_p9), 1041408  }
  0x10   : > { %2543 = vmatprep.subr.bf16.mxu0 (!%p316_p9), %v2542_v3  ;;  %v2554_v15 = vpack.c.bf16 (!%p316_p9), %v1940_v10, %v1939_v9  ;;  %v361_v19 = vld [vmem:[%s3649_s1 + $0x8] sm:$0xff] (!%p316_p9)  ;;  %v362_v22 = vld [vmem:[%s3649_s1 + $0x10] sm:$0xff] (!%p316_p9)  ;;  %v363_v23 = vld [vmem:[%s3649_s1 + $0x18] sm:$0xff] (!%p316_p9)  ;;  %v656_v2 = vunpack.c.l.s4 (!%p316_p9), %v2892_v1  ;;  %s2893_s28 = smov (!%p316_p9), 127   ;;  %vm2894_vm4 = vmmov (!%p316_p9), 0   ;;  %vm802_vm5 = vcmask (!%p316_p9), 1041409  }
  0x11   : > { %2545 = vmatpush3.bf16.msra.mxu0 (!%p316_p9), %v2542_v3  ;;  %v2558_v21 = vpack.c.bf16 (!%p316_p9), %v361_v19, %v360_v18  ;;  %v2562_v25 = vpack.c.bf16 (!%p316_p9), %v363_v23, %v362_v22  ;;  %v364_v26 = vld [vmem:[%s3649_s1 + $0x20] sm:$0xff] (!%p316_p9)  ;;  %v365_v27 = vld [vmem:[%s3649_s1 + $0x28] sm:$0xff] (!%p316_p9)  ;;  %v366_v29 = vld [vmem:[%s3649_s1 + $0x30] sm:$0xff] (!%p316_p9)  ;;  %v658_v3 = vlaneseq (!%p316_p9)  ;;  %vm805_vm6 = vcmask (!%p316_p9), 1042434   ;;  %s350_s21 = sand.u32 (!%p316_p9), 1, %s2881_s14  }
  0x12   : > { %2547 = vmatprep.subr.bf16.mxu0 (!%p316_p9), %v2546_v5  ;;  %v2566_v28 = vpack.c.bf16 (!%p316_p9), %v365_v27, %v364_v26  ;;  %v367_v30 = vld [vmem:[%s3649_s1 + $0x38] sm:$0xff] (!%p316_p9)  ;;  %v1945_v32 = vld [vmem:[%s3649_s1 + $0x80] sm:$0xff] (!%p316_p9)  ;;  %v1946_v33 = vld [vmem:[%s3649_s1 + $0x88] sm:$0xff] (!%p316_p9)  ;;  %v657_v4 = vunpack.c.0.s8 (!%p316_p9), %v656_v2  ;;  %vm808_vm7 = vcmask (!%p316_p9), 1043459   ;;  %vm811_vm8 = vcmask (!%p316_p9), 1044484   ;;  %s1861_s18 = scalar_lea.sflag (!%p316_p9), [#allocation3], %s350_s21 }
  0x13   : > { %v2570_v31 = vpack.c.bf16 (!%p316_p9), %v367_v30, %v366_v29  ;;  %v2574_v34 = vpack.c.bf16 (!%p316_p9), %v1946_v33, %v1945_v32  ;;  %v1947_v37 = vld [vmem:[%s3649_s1 + $0x90] sm:$0xff] (!%p316_p9)  ;;  %v1948_v38 = vld [vmem:[%s3649_s1 + $0x98] sm:$0xff] (!%p316_p9)  ;;  %v1949_v41 = vld [vmem:[%s3649_s1 + $0xa0] sm:$0xff] (!%p316_p9)  ;;  %vm814_vm9 = vcmask (!%p316_p9), 1045509   ;;  %vm817_vm10 = vcmask (!%p316_p9), 1046534  }
  0x14   : > { %v2578_v39 = vpack.c.bf16 (!%p316_p9), %v1948_v38, %v1947_v37  ;;  %v1950_v42 = vld [vmem:[%s3649_s1 + $0xa8] sm:$0xff] (!%p316_p9)  ;;  %v1951_v44 = vld [vmem:[%s3649_s1 + $0xb0] sm:$0xff] (!%p316_p9)  ;;  %v1952_v45 = vld [vmem:[%s3649_s1 + $0xb8] sm:$0xff] (!%p316_p9)  ;;  %vm820_vm11 = vcmask (!%p316_p9), 1047559   ;;  %vm823_vm12 = vcmask (!%p316_p9), 1039360   ;;  %vm828_vm13 = vcmask (!%p316_p9), 1040384  }
  0x15   : > { %s353_s26 = scalar_select %p352_p10, %s2973_s17, 1  ;;  %2549 = vmatpush3.bf16.msra.mxu0 %v2546_v5  ;;  %v2582_v43 = vpack.c.bf16 %v1950_v42, %v1949_v41  ;;  %v2586_v46 = vpack.c.bf16 %v1952_v45, %v1951_v44  ;;  %v831_v49 = vld [vmem:[%s3651_s3] sm:$0xff]  ;;  %v832_v50 = vld [vmem:[%s3651_s3 + $0x8] sm:$0xff]  ;;  %v833_v55 = vld [vmem:[%s3651_s3 + $0x10] sm:$0xff]  ;;  %v659_v5 = vshrl.u32 %v658_v3, 7 }
  0x16   : > { %2551 = vmatprep.subr.bf16.mxu0 %v2550_v8  ;;  %v1956_v51 = vld [vmem:[%s3651_s3 + $0x80] sm:$0xff]  ;;  %v2615_v53 = vpack.c.bf16 %v832_v50, %v831_v49  ;;  %v1957_v54 = vld [vmem:[%s3651_s3 + $0x88] sm:$0xff]  ;;  %v834_v56 = vld [vmem:[%s3651_s3 + $0x18] sm:$0xff] }
  0x17   : > { %s2782_s27 = smul.u32 24, %s353_s26  ;;  %v2591_v57 = vpack.c.bf16 %v1957_v54, %v1956_v51  ;;  %v1958_v58 = vld [vmem:[%s3651_s3 + $0x90] sm:$0xff]  ;;  %v1959_v59 = vld [vmem:[%s3651_s3 + $0x98] sm:$0xff]  ;;  %v2618_v60 = vpack.c.bf16 %v834_v56, %v833_v55  ;;  %v835_v62 = vld [vmem:[%s3651_s3 + $0x20] sm:$0xff]  ;;  %v660_v9 = vsub.s32 %v657_v4, %v659_v5  ;;  %s2056_s26 = sshll.u32 %s2973_s17, 4 }
  0x18   : > { %2616 = vmatpush3.bf16.msra.mxu1 %v2615_v53  ;;  %v2594_v61 = vpack.c.bf16 %v1959_v59, %v1958_v58  ;;  %v836_v63 = vld [vmem:[%s3651_s3 + $0x28] sm:$0xff]  ;;  %v1955_v6 = vld [vmem:[%s3650_s2] ss:$0 sm:$0xff]  ;;  %v837_v2 = vld [vmem:[%s3651_s3 + $0x30] sm:$0xff]  ;;  %s3606_s12 = scalar_lea.hbm %s3658_s10, %s2056_s26  ;;  %s2896_s17 = smov [#allocation2]  }
  0x19   : > { %s356_s20 = scalar_lea.vmem %s3648_s0, %s2782_s27  ;;  %2553 = vmatpush3.bf16.msra.mxu0 %v2550_v8  ;;  %2617 = vmatprep.subr.bf16.mxu1 %v2891_v52  ;;  %v2621_v0 = vpack.c.bf16 %v836_v63, %v835_v62  ;;  %v1961_v1 = vld [vmem:[%s3651_s3 + $0xa8] sm:$0xff]  ;;  %v838_v3 = vld [vmem:[%s3651_s3 + $0x38] sm:$0xff]  ;;  %vm1972_vm14 = vmneg %vm828_vm13  ;;  %s351_s27 = scalar_lea.vmem [#allocation2], %s350_s21 }
  0x1a   : > { %v357_v11 = vld [vmem:[%s356_s20] sm:$0xff]  ;;  %v3029_v12 = vld [vmem:[%s356_s20 + $0x8] sm:$0xff]  ;;  %v359_v16 = vld [vmem:[%s356_s20 + $0x10] sm:$0x3]  ;;  %2555 = vmatprep.subr.bf16.mxu0 %v2554_v15  ;;  %s1873_s29 = sshll.u32 %s351_s27, 4  ;;  %s2831_s25 = sshll.u32 %s2896_s17, 4  ;;  %s3608_s29 = int_to_ptr.vmem [resolvable:$true] %s1873_s29  ;;  %s2832_s25 = int_to_ptr.vmem [resolvable:$false] %s2831_s25 }
  0x1b   : > { %v381_v13 = vrot.slane %v357_v11, 1  ;;  %v382_v14 = vrot.slane %v3029_v12, 1  ;;  %v384_v20 = vrot.slane %v359_v16, 1  ;;  %v555_v35 = vrot.slane %v357_v11, 2  ;;  %s2827_s20 = scalar_lea.vmem %s3608_s29, 16  ;;  %p2834_p0 = scmp.lt.s32.totalorder %s3608_s29, %s2832_s25 }
  0x1c   : > { %v556_v36 = vrot.slane %v3029_v12, 2  ;;  %v558_v47 = vrot.slane %v359_v16, 2  ;;  %2619 = vmatpush3.bf16.msra.mxu1 %v2618_v60  ;;  %v1960_v60 = vld [vmem:[%s3651_s3 + $0xa0] sm:$0xff]  ;;  %p2828_p11 = scmp.ne.s32.totalorder %s3608_s29, %s2827_s20 }
  0x1d   : > { %v383_v17 = vsel %vm380_vm0, %v381_v13, %v382_v14  ;;  %2557 = vmatpush3.bf16.msra.mxu0 %v2554_v15  ;;  %v385_v24 = vsel %vm380_vm0, %v382_v14, %v384_v20  ;;  %2620 = vmatprep.subr.bf16.mxu1 %v2891_v52 }
  0x1e   : > { %2233 = vmatprep.mubr.msk.f32.mxu0 %vm386_vm1, %v383_v17  ;;  %2559 = vmatprep.subr.bf16.mxu0 %v2558_v21  ;;  %v557_v40 = vsel %vm554_vm2, %v555_v35, %v556_v36  ;;  %v559_v48 = vsel %vm554_vm2, %v556_v36, %v558_v47  ;;  %p2829_p12 = pnand %p2828_p11, %p2990_p5 }
  0x20   : > { %2234 = vmatmul.mubr.msk.f32.vlgmr.msra.gmra.mrb[0].mxu0 %vm386_vm1, %v385_v24  ;;  %2622 = vmatpush3.bf16.msra.mxu1 %v2621_v0  ;;  %p2830_p13 = pneg %p2829_p12 }
  0x21   : > { %2561 = vmatpush3.bf16.msra.mxu0 %v2558_v21  ;;  %2252 = vmatprep.mubr.msk.f32.mxu0 %vm386_vm1, %v357_v11 }
  0x22   : > { %2563 = vmatprep.subr.bf16.mxu0 %v2562_v25  ;;  %2623 = vmatprep.subr.bf16.mxu1 %v2891_v52 }
  0x25   : > { %2565 = vmatpush3.bf16.msra.mxu0 %v2562_v25 }
  0x26   : > { %2567 = vmatprep.subr.bf16.mxu0 %v2566_v28 }
  0x29   : > { %2569 = vmatpush3.bf16.msra.mxu0 %v2566_v28 }
  0x2a   : > { %2571 = vmatprep.subr.bf16.mxu0 %v2570_v31 }
  0x2d   : > { %2573 = vmatpush3.bf16.msra.mxu0 %v2570_v31 }
  0x2e   : > { %2575 = vmatprep.subr.bf16.mxu0 %v2574_v34 }
  0x30   : > { %2253 = vmatmul.mubr.msk.f32.vlgmr.msra.gmra.mrb[0].mxu0 %vm386_vm1, %v3029_v12 }
  0x31   : > { %2577 = vmatpush3.bf16.msra.mxu0 %v2574_v34  ;;  %2271 = vmatprep.mubr.msk.f32.mxu0 %vm386_vm1, %v557_v40 }
  0x32   : > { %2579 = vmatprep.subr.bf16.mxu0 %v2578_v39 }
  0x35   : > { %2581 = vmatpush3.bf16.msra.mxu0 %v2578_v39 }
  0x36   : > { %2583 = vmatprep.subr.bf16.mxu0 %v2582_v43 }
  0x39   : > { %2585 = vmatpush3.bf16.msra.mxu0 %v2582_v43 }
  0x3a   : > { %2587 = vmatprep.subr.bf16.mxu0 %v2586_v46 }
  0x3d   : > { %2589 = vmatpush3.bf16.msra.mxu0 %v2586_v46 }
  0x3e   : > { %2590 = vmatprep.subr.bf16.mxu0 %v2891_v52 }
  0x40   : > { %2272 = vmatmul.mubr.msk.f32.vlgmr.msra.gmra.mrb[0].mxu0 %vm386_vm1, %v559_v48 }
  0x41   : > { %2592 = vmatpush3.bf16.msra.mxu0 %v2591_v57 }
  0x42   : > { %2593 = vmatprep.subr.bf16.mxu0 %v2891_v52 }
  0x45   : > { %2595 = vmatpush3.bf16.msra.mxu0 %v2594_v61 }
  0x46   : > { %2596 = vmatprep.subr.bf16.mxu0 %v2891_v52 }
 0x113   : > { %v2273_v7 = vpop.f32.mrb[0].mxu0 }
 0x114   : > { %v649_v8 = vadd.f32 %v2273_v7, %v1955_v6  ;;  %v630_v10 = vpop.f32.mrb[1].mxu0 }
 0x115   : > { %v648_v11 = vadd.f32 %v1955_v6, %v630_v10  ;;  %v1963_v10 = vld [vmem:[%s3651_s3 + $0xb8] sm:$0xff] }
 0x116   : > { %v651_v12 = vmax.f32 %v649_v8, 0.0  ;;  %v1962_v8 = vld [vmem:[%s3651_s3 + $0xb0] sm:$0xff] }
 0x117   : > { %v650_v13 = vmax.f32 %v648_v11, 0.0  ;;  %v839_v11 = vld [vmem:[%s3651_s3 + $0x40] sm:$0xff] }
 0x118   : > { %v671_v14 = vcombine.high %v651_v12, %v651_v12  ;;  %v678_v15 = vrot.slane %v651_v12, %v660_v9  ;;  %v840_v12 = vld [vmem:[%s3651_s3 + $0x48] sm:$0xff] }
 0x119   : > { %v654_v16 = vcombine.high %v650_v13, %v650_v13  ;;  %v661_v17 = vrot.slane %v650_v13, %v660_v9 }
 0x11a   : > { %v685_v18 = vrot.slane %v671_v14, %v660_v9  ;;  %v686_v19 = vcombine.high %v678_v15, %v678_v15  ;;  %v725_v20 = vsel %vm696_vm3, %v678_v15, -inf  ;;  %v2597_v14 = vpack.c.bf16 %v1961_v1, %v1960_v60 }
 0x11b   : > { %v726_v21 = vrot.slane %v725_v20, 4  ;;  %v668_v22 = vrot.slane %v654_v16, %v660_v9  ;;  %v669_v23 = vcombine.high %v661_v17, %v661_v17  ;;  %v697_v24 = vsel %vm696_vm3, %v661_v17, -inf }
 0x11c   : > { %v687_v25 = vcombine.high %v685_v18, %v685_v18  ;;  %v732_v26 = vsel %vm696_vm3, %v686_v19, -inf  ;;  %v739_v27 = vsel %vm696_vm3, %v685_v18, -inf  ;;  %v698_v28 = vrot.slane %v697_v24, 4  ;;  %2598 = vmatpush3.bf16.msra.mxu0 %v2597_v14 }
 0x11d   : > { %v733_v29 = vrot.slane %v732_v26, 4  ;;  %v740_v30 = vrot.slane %v739_v27, 4  ;;  %v670_v31 = vcombine.high %v668_v22, %v668_v22  ;;  %v704_v32 = vsel %vm696_vm3, %v669_v23, -inf  ;;  %v1964_v23 = vld [vmem:[%s3651_s3 + $0xc0] sm:$0xff]  ;;  %2599 = vmatprep.subr.bf16.mxu0 %v2891_v52 }
 0x11e   : > { %v705_v33 = vrot.slane %v704_v32, 4  ;;  %v711_v34 = vsel %vm696_vm3, %v668_v22, -inf  ;;  %v727_v35 = vmax.f32 %v725_v20, %v726_v21  ;;  %v699_v36 = vmax.f32 %v697_v24, %v698_v28  ;;  %v1965_v24 = vld [vmem:[%s3651_s3 + $0xc8] sm:$0xff] }
 0x11f   : > { %v712_v37 = vrot.slane %v711_v34, 4  ;;  %v734_v38 = vmax.f32 %v732_v26, %v733_v29  ;;  %v718_v39 = vsel %vm696_vm3, %v670_v31, -inf  ;;  %v741_v46 = vmax.f32 %v739_v27, %v740_v30  ;;  %v842_v26 = vld [vmem:[%s3651_s3 + $0x58] sm:$0xff] }
 0x120   : > { %v728_v40 = vrot.slane %v727_v35, 2  ;;  %v700_v41 = vrot.slane %v699_v36, 2  ;;  %v706_v42 = vmax.f32 %v704_v32, %v705_v33  ;;  %v719_v43 = vrot.slane %v718_v39, 4  ;;  %v1966_v33 = vld [vmem:[%s3651_s3 + $0xd0] sm:$0xff] }
 0x121   : > { %v735_v44 = vrot.slane %v734_v38, 2  ;;  %v713_v45 = vmax.f32 %v711_v34, %v712_v37  ;;  %v746_v47 = vsel %vm696_vm3, %v687_v25, -inf  ;;  %v742_v63 = vrot.slane %v741_v46, 2  ;;  %v841_v25 = vld [vmem:[%s3651_s3 + $0x50] sm:$0xff]  ;;  %v1967_v34 = vld [vmem:[%s3651_s3 + $0xd8] sm:$0xff] }
 0x122   : > { %v729_v48 = vmax.f32 %v727_v35, %v728_v40  ;;  %v701_v49 = vmax.f32 %v699_v36, %v700_v41  ;;  %v707_v50 = vrot.slane %v706_v42, 2  ;;  %v720_v51 = vmax.f32 %v718_v39, %v719_v43  ;;  %v843_v35 = vld [vmem:[%s3651_s3 + $0x60] sm:$0xff]  ;;  %v844_v36 = vld [vmem:[%s3651_s3 + $0x68] sm:$0xff] }
 0x123   : > { %v736_v53 = vmax.f32 %v734_v38, %v735_v44  ;;  %v714_v54 = vrot.slane %v713_v45, 2  ;;  %v747_v55 = vrot.slane %v746_v47, 4  ;;  %v2624_v15 = vpack.c.bf16 %v838_v3, %v837_v2  ;;  %v1969_v43 = vld [vmem:[%s3651_s3 + $0xe8] sm:$0xff]  ;;  %v845_v44 = vld [vmem:[%s3651_s3 + $0x70] sm:$0xff] }
 0x124   : > { %v730_v56 = vrot.slane %v729_v48, 1  ;;  %v702_v57 = vrot.slane %v701_v49, 1  ;;  %v708_v58 = vmax.f32 %v706_v42, %v707_v50  ;;  %v721_v59 = vrot.slane %v720_v51, 2  ;;  %v1968_v42 = vld [vmem:[%s3651_s3 + $0xe0] sm:$0xff] }
 0x125   : > { %v737_v61 = vrot.slane %v736_v53, 1  ;;  %v715_v62 = vmax.f32 %v713_v45, %v714_v54  ;;  %v748_v0 = vmax.f32 %v746_v47, %v747_v55  ;;  %v743_v18 = vmax.f32 %v741_v46, %v742_v63  ;;  %2625 = vmatpush3.bf16.msra.mxu1 %v2624_v15  ;;  %v846_v45 = vld [vmem:[%s3651_s3 + $0x78] sm:$0xff] }
 0x126   : > { %v3152_v4 = vmax.f32 %v729_v48, %v730_v56  ;;  %v3154_v5 = vmax.f32 %v701_v49, %v702_v57  ;;  %v709_v6 = vrot.slane %v708_v58, 1  ;;  %v722_v7 = vmax.f32 %v720_v51, %v721_v59  ;;  %2626 = vmatprep.subr.bf16.mxu1 %v2891_v52  ;;  %v1970_v48 = vld [vmem:[%s3651_s3 + $0xf0] sm:$0xff]  ;;  %v1971_v49 = vld [vmem:[%s3651_s3 + $0xf8] sm:$0xff] }
 0x127   : > { %v749_v9 = vrot.slane %v748_v0, 2  ;;  %v716_v16 = vrot.slane %v715_v62, 1  ;;  %v3174_v20 = vmax.f32 %v736_v53, %v737_v61  ;;  %v2600_v21 = vpack.c.bf16 %v1963_v10, %v1962_v8 }
 0x128   : > { %769 = vrot.lane.b32.xlu0 %v3152_v4, %s2893_s28  ;;  %761 = vrot.lane.b32.xlu1 %v3154_v5, %s2893_s28  ;;  %v3172_v13 = vmax.f32 %v708_v58, %v709_v6  ;;  %v723_v17 = vrot.slane %v722_v7, 1  ;;  %v2627_v22 = vpack.c.bf16 %v840_v12, %v839_v11  ;;  %v744_v29 = vrot.slane %v743_v18, 1 }
 0x129   : > { %v750_v19 = vmax.f32 %v748_v0, %v749_v9  ;;  %v3194_v27 = vmax.f32 %v715_v62, %v716_v16  ;;  %2601 = vmatpush3.bf16.msra.mxu0 %v2600_v21  ;;  %v2603_v31 = vpack.c.bf16 %v1965_v24, %v1964_v23  ;;  %v2630_v32 = vpack.c.bf16 %v842_v26, %v841_v25  ;;  %v1975_v21 = vld [vmem:[%s3651_s3 + $0x108] sm:$0xff] }
 0x12a   : > { %v3196_v28 = vmax.f32 %v722_v7, %v723_v17  ;;  %2628 = vmatpush3.bf16.msra.mxu1 %v2627_v22  ;;  %2602 = vmatprep.subr.bf16.mxu0 %v2891_v52  ;;  %v3216_v37 = vmax.f32 %v743_v18, %v744_v29  ;;  %v2895_v38 = vmov 0.0   ;;  %v2606_v40 = vpack.c.bf16 %v1967_v34, %v1966_v33  ;;  %v1980_v34 = vld [vmem:[%s3651_s3 + $0x130] sm:$0xff] }
 0x12b   : > { %v751_v30 = vrot.slane %v750_v19, 1  ;;  %2629 = vmatprep.subr.bf16.mxu1 %v2891_v52  ;;  %2341 = vmatprep.mubr.msk.f32.mxu1 %vm2894_vm4, %v2895_v38  ;;  %v2633_v41 = vpack.c.bf16 %v844_v36, %v843_v35  ;;  %v2609_v46 = vpack.c.bf16 %v1969_v43, %v1968_v42  ;;  %v2636_v47 = vpack.c.bf16 %v846_v45, %v845_v44  ;;  %v1981_v35 = vld [vmem:[%s3651_s3 + $0x138] sm:$0xff]  ;;  %v1986_v44 = vld [vmem:[%s3651_s3 + $0x160] sm:$0xff]  ;;  %v1987_v45 = vld [vmem:[%s3651_s3 + $0x168] sm:$0xff] }
 0x12c   : > { %763 = vrot.lane.b32.xlu0 %v3172_v13, %s2893_s28  ;;  %771 = vrot.lane.b32.xlu1 %v3174_v20, %s2893_s28  ;;  %v2612_v50 = vpack.c.bf16 %v1971_v49, %v1970_v48  ;;  %v2648_v36 = vpack.c.bf16 %v1981_v35, %v1980_v34  ;;  %v1985_v42 = vld [vmem:[%s3651_s3 + $0x158] sm:$0xff]  ;;  %v2007_v35 = vld [vmem:[%s3653_s5 + $0xb0] sm:$0xff] }
 0x12d   : > { %2306 = vmatprep.mubr.msk.f32.mxu0 %vm2894_vm4, %v2895_v38  ;;  %v752_v39 = vmax.f32 %v750_v19, %v751_v30  ;;  %2604 = vmatpush3.bf16.msra.mxu0 %v2603_v31  ;;  %v1978_v31 = vld [vmem:[%s3651_s3 + $0x120] sm:$0xff]  ;;  %v1989_v48 = vld [vmem:[%s3651_s3 + $0x178] sm:$0xff] }
 0x12e   : > { %2631 = vmatpush3.bf16.msra.mxu1 %v2630_v32  ;;  %2605 = vmatprep.subr.bf16.mxu0 %v2891_v52  ;;  %v1979_v32 = vld [vmem:[%s3651_s3 + $0x128] sm:$0xff] }
 0x12f   : > { %2632 = vmatprep.subr.bf16.mxu1 %v2891_v52  ;;  %v2645_v33 = vpack.c.bf16 %v1979_v32, %v1978_v31  ;;  %v2005_v32 = vld [vmem:[%s3653_s5 + $0xa0] sm:$0xff] }
 0x130   : > { %765 = vrot.lane.b32.xlu0 %v3194_v27, %s2893_s28  ;;  %767 = vrot.lane.b32.xlu1 %v3196_v28, %s2893_s28 }
 0x131   : > { %2607 = vmatpush3.bf16.msra.mxu0 %v2606_v40 }
 0x132   : > { %2634 = vmatpush3.bf16.msra.mxu1 %v2633_v41  ;;  %2608 = vmatprep.subr.bf16.mxu0 %v2891_v52  ;;  %v1984_v41 = vld [vmem:[%s3651_s3 + $0x150] sm:$0xff] }
 0x133   : > { %2635 = vmatprep.subr.bf16.mxu1 %v2891_v52  ;;  %v2654_v43 = vpack.c.bf16 %v1985_v42, %v1984_v41 }
 0x134   : > { %773 = vrot.lane.b32.xlu0 %v3216_v37, %s2893_s28  ;;  %775 = vrot.lane.b32.xlu1 %v752_v39, %s2893_s28  ;;  %s2833_s28 = scalar_lea.vmem %s2832_s25, 32 }
 0x135   : > { %2610 = vmatpush3.bf16.msra.mxu0 %v2609_v46  ;;  %v2657_v46 = vpack.c.bf16 %v1987_v45, %v1986_v44  ;;  %v2013_v44 = vld [vmem:[%s3653_s5 + $0xd8] sm:$0xff]  ;;  %p2835_p1 = scmp.lt.s32.totalorder %s2833_s28, %s2827_s20 }
 0x136   : > { %2637 = vmatpush3.bf16.msra.mxu1 %v2636_v47  ;;  %2611 = vmatprep.subr.bf16.mxu0 %v2891_v52  ;;  %v1988_v47 = vld [vmem:[%s3651_s3 + $0x170] sm:$0xff] }
 0x137   : > { %2674 = vmatprep.subr.bf16.mxu1 %v2891_v52  ;;  %v2660_v49 = vpack.c.bf16 %v1989_v48, %v1988_v47  ;;  %v2015_v47 = vld [vmem:[%s3653_s5 + $0xe8] sm:$0xff]  ;;  %p2836_p2 = por %p2835_p1, %p2834_p0 }
 0x139   : > { %2613 = vmatpush3.bf16.msra.mxu0 %v2612_v50  ;;  %p2837_p3 = pnand %p2836_p2, %p2830_p13 }
 0x13a   : > { %2638 = vmatprep.subr.bf16.mxu0 %v2891_v52 }
 0x19a   : > { %v770_v51 = vpop.permute.xlu0 %769  ;;  %v762_v53 = vpop.permute.xlu1 %761 }
 0x19b   : > { %v789_v60 = vmax.f32 %v3152_v4, %v770_v51  ;;  %v785_v63 = vmax.f32 %v3154_v5, %v762_v53 }
 0x19d   : > { %v810_v8 = vrot.slane %v789_v60, 4  ;;  %v1115_v60 = vld [vmem:[%s3653_s5 + $0x18] sm:$0xff] }
 0x19e   : > { %v764_v54 = vpop.permute.xlu0 %763  ;;  %v772_v55 = vpop.permute.xlu1 %771 }
 0x19f   : > { %v786_v56 = vmax.f32 %v3172_v13, %v764_v54  ;;  %v790_v0 = vmax.f32 %v3174_v20, %v772_v55  ;;  %v1974_v20 = vld [vmem:[%s3651_s3 + $0x100] sm:$0xff]  ;;  %v1113_v55 = vld [vmem:[%s3653_s5 + $0x8] sm:$0xff] }
 0x1a0   : > { %v2639_v26 = vpack.c.bf16 %v1975_v21, %v1974_v20  ;;  %v1112_v54 = vld [vmem:[%s3653_s5] sm:$0xff] }
 0x1a1   : > { %v801_v57 = vrot.slane %v786_v56, 7  ;;  %v813_v11 = vrot.slane %v790_v0, 3  ;;  %v1992_v56 = vld [vmem:[%s3653_s5 + $0x40] sm:$0xff] }
 0x1a2   : > { %v766_v58 = vpop.permute.xlu0 %765  ;;  %v768_v59 = vpop.permute.xlu1 %767  ;;  %v1990_v20 = vld [vmem:[%s3652_s4] ss:$0 sm:$0xff] }
 0x1a3   : > { %v787_v61 = vmax.f32 %v3194_v27, %v766_v58  ;;  %v788_v62 = vmax.f32 %v3196_v28, %v768_v59  ;;  %v803_v3 = vsel %vm802_vm5, %v801_v57, %v785_v63  ;;  %v1976_v27 = vld [vmem:[%s3651_s3 + $0x110] sm:$0xff]  ;;  %v1977_v28 = vld [vmem:[%s3651_s3 + $0x118] sm:$0xff]  ;;  %v2663_v57 = vpack.c.bf16 %v1113_v55, %v1112_v54  ;;  %v1993_v58 = vld [vmem:[%s3653_s5 + $0x48] sm:$0xff] }
 0x1a4   : > { %v2642_v30 = vpack.c.bf16 %v1977_v28, %v1976_v27  ;;  %v1114_v59 = vld [vmem:[%s3653_s5 + $0x10] sm:$0xff]  ;;  %v1995_v63 = vld [vmem:[%s3653_s5 + $0x58] sm:$0xff]  ;;  %v2020_v54 = vld [vmem:[%s3653_s5 + $0x108] sm:$0xff] }
 0x1a5   : > { %v804_v1 = vrot.slane %v787_v61, 6  ;;  %v807_v2 = vrot.slane %v788_v62, 5  ;;  %v2675_v61 = vpack.c.bf16 %v1993_v58, %v1992_v56  ;;  %v1994_v62 = vld [vmem:[%s3653_s5 + $0x50] sm:$0xff]  ;;  %v2666_v0 = vpack.c.bf16 %v1115_v60, %v1114_v59  ;;  %v2022_v58 = vld [vmem:[%s3653_s5 + $0x118] sm:$0xff]  ;;  %v2023_v60 = vld [vmem:[%s3653_s5 + $0x120] sm:$0xff] }
 0x1a6   : > { %v774_v6 = vpop.permute.xlu0 %773  ;;  %v776_v7 = vpop.permute.xlu1 %775 }
 0x1a7   : > { %v806_v4 = vsel %vm805_vm6, %v804_v1, %v803_v3  ;;  %v791_v9 = vmax.f32 %v3216_v37, %v774_v6  ;;  %v792_v10 = vmax.f32 %v752_v39, %v776_v7  ;;  %v1982_v37 = vld [vmem:[%s3651_s3 + $0x140] sm:$0xff]  ;;  %v1983_v39 = vld [vmem:[%s3651_s3 + $0x148] sm:$0xff]  ;;  %v2678_v1 = vpack.c.bf16 %v1995_v63, %v1994_v62  ;;  %v2025_v63 = vld [vmem:[%s3653_s5 + $0x130] sm:$0xff] }
 0x1a8   : > { %v809_v12 = vsel %vm808_vm7, %v807_v2, %v806_v4  ;;  %v2651_v40 = vpack.c.bf16 %v1983_v39, %v1982_v37  ;;  %v1116_v2 = vld [vmem:[%s3653_s5 + $0x20] sm:$0xff]  ;;  %v1117_v3 = vld [vmem:[%s3653_s5 + $0x28] sm:$0xff] }
 0x1a9   : > { %v812_v5 = vsel %vm811_vm8, %v810_v8, %v809_v12  ;;  %v816_v13 = vrot.slane %v791_v9, 2  ;;  %v819_v14 = vrot.slane %v792_v10, 1  ;;  %v2669_v6 = vpack.c.bf16 %v1117_v3, %v1116_v2  ;;  %v1996_v7 = vld [vmem:[%s3653_s5 + $0x60] sm:$0xff]  ;;  %v1997_v8 = vld [vmem:[%s3653_s5 + $0x68] sm:$0xff]  ;;  %v1118_v9 = vld [vmem:[%s3653_s5 + $0x30] sm:$0xff] }
 0x1aa   : > { %v815_v15 = vsel %vm814_vm9, %v813_v11, %v812_v5  ;;  %v2681_v4 = vpack.c.bf16 %v1997_v8, %v1996_v7  ;;  %v1119_v10 = vld [vmem:[%s3653_s5 + $0x38] sm:$0xff]  ;;  %v1998_v12 = vld [vmem:[%s3653_s5 + $0x70] sm:$0xff]  ;;  %v2010_v39 = vld [vmem:[%s3653_s5 + $0xc0] sm:$0xff] }
 0x1ab   : > { %v818_v16 = vsel %vm817_vm10, %v816_v13, %v815_v15  ;;  %v2672_v11 = vpack.c.bf16 %v1119_v10, %v1118_v9  ;;  %v1999_v5 = vld [vmem:[%s3653_s5 + $0x78] sm:$0xff]  ;;  %v2028_v2 = vld [vmem:[%s3653_s5 + $0x140] sm:$0xff]  ;;  %v2029_v3 = vld [vmem:[%s3653_s5 + $0x148] sm:$0xff] }
 0x1ac   : > { %v821_v17 = vsel %vm820_vm11, %v819_v14, %v818_v16  ;;  %v2684_v13 = vpack.c.bf16 %v1999_v5, %v1998_v12  ;;  %v2030_v8 = vld [vmem:[%s3653_s5 + $0x150] sm:$0xff]  ;;  %v2032_v10 = vld [vmem:[%s3653_s5 + $0x160] sm:$0xff] }
 0x1ad   : > { %v824_v18 = vsel %vm823_vm12, %v821_v17, 0.0  ;;  %v2034_v5 = vld [vmem:[%s3653_s5 + $0x170] sm:$0xff] }
 0x1ae   : > { %v826_v19 = vrot.slane %v824_v18, 7 }
 0x1b0   : > { %v829_v22 = vsel %vm828_vm13, 0.0, %v826_v19  ;;  %v830_v23 = vsel %vm828_vm13, %v826_v19, 0.0  ;;  %2342 = vmatmul.mubr.msk.f32.vlgmr.msra.gmra.mrb[0].mxu1 %vm1972_vm14, %v826_v19 }
 0x1b1   : > { %v866_v24 = vrot.slane %v829_v22, 1  ;;  %v867_v25 = vrot.slane %v830_v23, 1  ;;  %2414 = vmatprep.mubr.msk.f32.mxu1 %vm2894_vm4, %v2895_v38  ;;  %v1027_v50 = vrot.slane %v829_v22, 2  ;;  %v1028_v51 = vrot.slane %v830_v23, 2  ;;  %2676 = vmatpush3.bf16.msra.mxu1 %v2675_v61  ;;  %v2024_v61 = vld [vmem:[%s3653_s5 + $0x128] sm:$0xff] }
 0x1b2   : > { %2677 = vmatprep.subr.bf16.mxu1 %v2891_v52  ;;  %v2717_v62 = vpack.c.bf16 %v2024_v61, %v2023_v60 }
 0x1b3   : > { %v868_v29 = vsel %vm380_vm0, %v866_v24, %v867_v25  ;;  %v1029_v53 = vsel %vm554_vm2, %v1027_v50, %v1028_v51  ;;  %v2001_v24 = vld [vmem:[%s3653_s5 + $0x80] sm:$0xff]  ;;  %v2002_v25 = vld [vmem:[%s3653_s5 + $0x88] sm:$0xff]  ;;  %v2017_v50 = vld [vmem:[%s3653_s5 + $0xf8] sm:$0xff]  ;;  %vm1784_vm0 = vcmask 261120  }
 0x1b4   : > { %2307 = vmatmul.mubr.f32.vlgmr.msra.gmra.mrb[2].mxu0 %v868_v29  ;;  %v2687_v27 = vpack.c.bf16 %v2002_v25, %v2001_v24  ;;  %v2003_v29 = vld [vmem:[%s3653_s5 + $0x90] sm:$0xff] }
 0x1b5   : > { %2640 = vmatpush3.bf16.msra.mxu0 %v2639_v26  ;;  %2376 = vmatprep.mubr.msk.f32.mxu0 %vm2894_vm4, %v2895_v38  ;;  %v2043_v25 = vld [vmem:[%s3653_s5 + $0x1b0] sm:$0xff] }
 0x1b6   : > { %2641 = vmatprep.subr.bf16.mxu0 %v2891_v52  ;;  %2679 = vmatpush3.bf16.msra.mxu1 %v2678_v1 }
 0x1b7   : > { %2680 = vmatprep.subr.bf16.mxu1 %v2891_v52 }
 0x1b9   : > { %2643 = vmatpush3.bf16.msra.mxu0 %v2642_v30  ;;  %v2004_v30 = vld [vmem:[%s3653_s5 + $0x98] sm:$0xff] }
 0x1ba   : > { %2644 = vmatprep.subr.bf16.mxu0 %v2891_v52  ;;  %2682 = vmatpush3.bf16.msra.mxu1 %v2681_v4  ;;  %v2690_v31 = vpack.c.bf16 %v2004_v30, %v2003_v29  ;;  %v2031_v4 = vld [vmem:[%s3653_s5 + $0x158] sm:$0xff]  ;;  %v2046_v29 = vld [vmem:[%s3653_s5 + $0x1c0] sm:$0xff]  ;;  %v2047_v30 = vld [vmem:[%s3653_s5 + $0x1c8] sm:$0xff] }
 0x1bb   : > { %2683 = vmatprep.subr.bf16.mxu1 %v2891_v52  ;;  %v2726_v9 = vpack.c.bf16 %v2031_v4, %v2030_v8 }
 0x1bd   : > { %2646 = vmatpush3.bf16.msra.mxu0 %v2645_v33  ;;  %v2006_v33 = vld [vmem:[%s3653_s5 + $0xa8] sm:$0xff] }
 0x1be   : > { %2647 = vmatprep.subr.bf16.mxu0 %v2891_v52  ;;  %2685 = vmatpush3.bf16.msra.mxu1 %v2684_v13  ;;  %v2693_v34 = vpack.c.bf16 %v2006_v33, %v2005_v32  ;;  %v2035_v13 = vld [vmem:[%s3653_s5 + $0x178] sm:$0xff]  ;;  %v2048_v33 = vld [vmem:[%s3653_s5 + $0x1d0] sm:$0xff] }
 0x1bf   : > { %2686 = vmatprep.subr.bf16.mxu1 %v2891_v52 }
 0x1c1   : > { %2649 = vmatpush3.bf16.msra.mxu0 %v2648_v36  ;;  %v2008_v36 = vld [vmem:[%s3653_s5 + $0xb8] sm:$0xff] }
 0x1c2   : > { %2650 = vmatprep.subr.bf16.mxu0 %v2891_v52  ;;  %v2696_v37 = vpack.c.bf16 %v2008_v36, %v2007_v35  ;;  %v2050_v36 = vld [vmem:[%s3653_s5 + $0x1e0] sm:$0xff] }
 0x1c5   : > { %2652 = vmatpush3.bf16.msra.mxu0 %v2651_v40  ;;  %v2011_v40 = vld [vmem:[%s3653_s5 + $0xc8] sm:$0xff] }
 0x1c6   : > { %2653 = vmatprep.subr.bf16.mxu0 %v2891_v52  ;;  %v2699_v41 = vpack.c.bf16 %v2011_v40, %v2010_v39  ;;  %v1779_v39 = vld [vmem:[%s3656_s8] sm:$0xff]  ;;  %v1780_v40 = vld [vmem:[%s3656_s8 + $0x8] sm:$0xff] }
 0x1c9   : > { %2655 = vmatpush3.bf16.msra.mxu0 %v2654_v43  ;;  %v2012_v43 = vld [vmem:[%s3653_s5 + $0xd0] sm:$0xff] }
 0x1ca   : > { %2656 = vmatprep.subr.bf16.mxu0 %v2891_v52  ;;  %v2702_v45 = vpack.c.bf16 %v2013_v44, %v2012_v43  ;;  %v2053_v43 = vld [vmem:[%s3653_s5 + $0x1f8] sm:$0xff] }
 0x1cd   : > { %2658 = vmatpush3.bf16.msra.mxu0 %v2657_v46  ;;  %v2014_v46 = vld [vmem:[%s3653_s5 + $0xe0] sm:$0xff] }
 0x1ce   : > { %2659 = vmatprep.subr.bf16.mxu0 %v2891_v52  ;;  %v2705_v48 = vpack.c.bf16 %v2015_v47, %v2014_v46  ;;  %v1781_v46 = vld [vmem:[%s3656_s8 + $0x10] sm:$0xff]  ;;  %v1782_v47 = vld [vmem:[%s3656_s8 + $0x18] sm:$0xff] }
 0x1d1   : > { %2661 = vmatpush3.bf16.msra.mxu0 %v2660_v49  ;;  %v2016_v49 = vld [vmem:[%s3653_s5 + $0xf0] sm:$0xff] }
 0x1d2   : > { %2662 = vmatprep.subr.bf16.mxu0 %v2891_v52  ;;  %v2708_v51 = vpack.c.bf16 %v2017_v50, %v2016_v49 }
 0x1d4   : > { %2377 = vmatmul.mubr.f32.vlgmr.msra.gmra.mrb[4].mxu0 %v1029_v53  ;;  %v2019_v53 = vld [vmem:[%s3653_s5 + $0x100] sm:$0xff] }
 0x1d5   : > { %2395 = vmatprep.mubr.msk.f32.mxu0 %vm2894_vm4, %v2895_v38  ;;  %2664 = vmatpush3.bf16.msra.mxu0 %v2663_v57  ;;  %v2711_v55 = vpack.c.bf16 %v2020_v54, %v2019_v53  ;;  %v2021_v57 = vld [vmem:[%s3653_s5 + $0x110] sm:$0xff]  ;;  %v1776_v53 = vld [vmem:[%s3655_s7] sm:$0x1] }
 0x1d6   : > { %2665 = vmatprep.subr.bf16.mxu0 %v2891_v52  ;;  %v2714_v59 = vpack.c.bf16 %v2022_v58, %v2021_v57  ;;  %v1783_v58 = vld [vmem:[%s3657_s9] sm:$0x1] }
 0x1d9   : > { %2667 = vmatpush3.bf16.msra.mxu0 %v2666_v0  ;;  %v2026_v0 = vld [vmem:[%s3653_s5 + $0x138] sm:$0xff] }
 0x1da   : > { %2668 = vmatprep.subr.bf16.mxu0 %v2891_v52  ;;  %v2720_v1 = vpack.c.bf16 %v2026_v0, %v2025_v63 }
 0x1dd   : > { %2670 = vmatpush3.bf16.msra.mxu0 %v2669_v6  ;;  %v2723_v6 = vpack.c.bf16 %v2029_v3, %v2028_v2 }
 0x1de   : > { %2671 = vmatprep.subr.bf16.mxu0 %v2891_v52 }
 0x1e1   : > { %2673 = vmatpush3.bf16.msra.mxu0 %v2672_v11  ;;  %v2033_v11 = vld [vmem:[%s3653_s5 + $0x168] sm:$0xff] }
 0x1e2   : > { %2758 = vmatprep.subr.bf16.mxu0 %v2891_v52  ;;  %v2729_v12 = vpack.c.bf16 %v2033_v11, %v2032_v10 }
 0x283   : > { %v1006_v14 = vpop.f32.mrb[0].mxu1 }
 0x284   : > { %v2343_v15 = vpop.f32.mrb[1].mxu1 }
 0x285   : > { %v2037_v15 = vld [vmem:[%s3653_s5 + $0x180] sm:$0xff] }
 0x287   : > { %v936_v16 = vpop.f32.mrb[2].mxu0 }
 0x288   : > { %v1007_v17 = vadd.f32 %v1006_v14, %v936_v16  ;;  %v2308_v18 = vpop.f32.mrb[3].mxu0  ;;  %v2732_v14 = vpack.c.bf16 %v2035_v13, %v2034_v5  ;;  %v2038_v16 = vld [vmem:[%s3653_s5 + $0x188] sm:$0xff] }
 0x2a7   : > { %v1097_v19 = vpop.f32.mrb[4].mxu0 }
 0x2a8   : > { %v1101_v21 = vadd.f32 %v1097_v19, %v1007_v17  ;;  %v2378_v22 = vpop.f32.mrb[5].mxu0  ;;  %v2735_v17 = vpack.c.bf16 %v2038_v16, %v2037_v15  ;;  %v2039_v19 = vld [vmem:[%s3653_s5 + $0x190] sm:$0xff] }
 0x2a9   : > { %v2041_v22 = vld [vmem:[%s3653_s5 + $0x1a0] sm:$0xff] }
 0x2aa   : > { %v1109_v23 = vadd.f32 %v1990_v20, %v1101_v21  ;;  %v2040_v20 = vld [vmem:[%s3653_s5 + $0x198] sm:$0xff] }
 0x2ab   : > { %v2738_v21 = vpack.c.bf16 %v2040_v20, %v2039_v19 }
 0x2ac   : > { %v3386_v26 = vmax.f32 %v1109_v23, 0.0  ;;  %v2042_v23 = vld [vmem:[%s3653_s5 + $0x1a8] sm:$0xff] }
 0x2ad   : > { %v2741_v24 = vpack.c.bf16 %v2042_v23, %v2041_v22 }
 0x2ae   : > { %2396 = vmatmul.mubr.msk.f32.vlgmr.msra.gmra.mrb[6].mxu0 %vm386_vm1, %v3386_v26  ;;  %v1203_v28 = vrot.slane %v3386_v26, 1  ;;  %v1286_v42 = vrot.slane %v3386_v26, 2  ;;  %v1369_v56 = vrot.slane %v3386_v26, 3  ;;  %v1452_v7 = vrot.slane %v3386_v26, 4 }
 0x2af   : > { %2539 = vmatprep.mubr.msk.f32.mxu0 %vm2894_vm4, %v2895_v38  ;;  %v1535_v18 = vrot.slane %v3386_v26, 5  ;;  %v1618_v32 = vrot.slane %v3386_v26, 6 }
 0x2b0   : > { %2415 = vmatmul.mubr.msk.f32.vlgmr.msra.gmra.mrb[2].mxu1 %vm386_vm1, %v1203_v28 }
 0x2b1   : > { %2688 = vmatpush3.bf16.msra.mxu1 %v2687_v27  ;;  %2433 = vmatprep.mubr.msk.f32.mxu1 %vm2894_vm4, %v2895_v38  ;;  %v2044_v27 = vld [vmem:[%s3653_s5 + $0x1b8] sm:$0xff] }
 0x2b2   : > { %2689 = vmatprep.subr.bf16.mxu1 %v2891_v52  ;;  %v2744_v28 = vpack.c.bf16 %v2044_v27, %v2043_v25 }
 0x2b5   : > { %2691 = vmatpush3.bf16.msra.mxu1 %v2690_v31  ;;  %v2747_v31 = vpack.c.bf16 %v2047_v30, %v2046_v29 }
 0x2b6   : > { %2692 = vmatprep.subr.bf16.mxu1 %v2891_v52 }
 0x2b9   : > { %2694 = vmatpush3.bf16.msra.mxu1 %v2693_v34  ;;  %v2049_v34 = vld [vmem:[%s3653_s5 + $0x1d8] sm:$0xff] }
 0x2ba   : > { %2695 = vmatprep.subr.bf16.mxu1 %v2891_v52  ;;  %v2750_v35 = vpack.c.bf16 %v2049_v34, %v2048_v33 }
 0x2bd   : > { %2697 = vmatpush3.bf16.msra.mxu1 %v2696_v37  ;;  %v2051_v37 = vld [vmem:[%s3653_s5 + $0x1e8] sm:$0xff] }
 0x2be   : > { %2698 = vmatprep.subr.bf16.mxu1 %v2891_v52 }
 0x2c0   : > { %2434 = vmatmul.mubr.msk.f32.vlgmr.msra.gmra.mrb[2].mxu1 %vm386_vm1, %v1286_v42  ;;  %v2753_v42 = vpack.c.bf16 %v2051_v37, %v2050_v36 }
 0x2c1   : > { %2700 = vmatpush3.bf16.msra.mxu1 %v2699_v41  ;;  %2452 = vmatprep.mubr.msk.f32.mxu1 %vm2894_vm4, %v2895_v38  ;;  %v2759_v41 = vpack.c.bf16 %v1780_v40, %v1779_v39 }
 0x2c2   : > { %2701 = vmatprep.subr.bf16.mxu1 %v2891_v52 }
 0x2c3   : > { %2760 = vmatpush3.bf16.msra.mxu0 %v2759_v41 }
 0x2c4   : > { %2761 = vmatprep.subr.bf16.mxu0 %v2891_v52 }
 0x2c5   : > { %2703 = vmatpush3.bf16.msra.mxu1 %v2702_v45  ;;  %v1701_v45 = vrot.slane %v3386_v26, 7 }
 0x2c6   : > { %2704 = vmatprep.subr.bf16.mxu1 %v2891_v52 }
 0x2c9   : > { %2706 = vmatpush3.bf16.msra.mxu1 %v2705_v48  ;;  %v2762_v48 = vpack.c.bf16 %v1782_v47, %v1781_v46 }
 0x2ca   : > { %2707 = vmatprep.subr.bf16.mxu1 %v2891_v52 }
 0x2cb   : > { %2763 = vmatpush3.bf16.msra.mxu0 %v2762_v48 }
 0x2cd   : > { %2709 = vmatpush3.bf16.msra.mxu1 %v2708_v51 }
 0x2ce   : > { %2710 = vmatprep.subr.bf16.mxu1 %v2891_v52 }
 0x2d0   : > { %2453 = vmatmul.mubr.msk.f32.vlgmr.msra.gmra.mrb[2].mxu1 %vm386_vm1, %v1369_v56 }
 0x2d1   : > { %2712 = vmatpush3.bf16.msra.mxu1 %v2711_v55  ;;  %2471 = vmatprep.mubr.msk.f32.mxu1 %vm2894_vm4, %v2895_v38 }
 0x2d2   : > { %2713 = vmatprep.subr.bf16.mxu1 %v2891_v52 }
 0x2d5   : > { %2715 = vmatpush3.bf16.msra.mxu1 %v2714_v59 }
 0x2d6   : > { %2716 = vmatprep.subr.bf16.mxu1 %v2891_v52 }
 0x2d9   : > { %2718 = vmatpush3.bf16.msra.mxu1 %v2717_v62 }
 0x2da   : > { %2719 = vmatprep.subr.bf16.mxu1 %v2891_v52 }
 0x2dd   : > { %2721 = vmatpush3.bf16.msra.mxu1 %v2720_v1 }
 0x2de   : > { %2722 = vmatprep.subr.bf16.mxu1 %v2891_v52 }
 0x2e0   : > { %2472 = vmatmul.mubr.msk.f32.vlgmr.msra.gmra.mrb[2].mxu1 %vm386_vm1, %v1452_v7 }
 0x2e1   : > { %2724 = vmatpush3.bf16.msra.mxu1 %v2723_v6  ;;  %2490 = vmatprep.mubr.msk.f32.mxu1 %vm2894_vm4, %v2895_v38 }
 0x2e2   : > { %2725 = vmatprep.subr.bf16.mxu1 %v2891_v52 }
 0x2e5   : > { %2727 = vmatpush3.bf16.msra.mxu1 %v2726_v9 }
 0x2e6   : > { %2728 = vmatprep.subr.bf16.mxu1 %v2891_v52 }
 0x2e9   : > { %2730 = vmatpush3.bf16.msra.mxu1 %v2729_v12 }
 0x2ea   : > { %2731 = vmatprep.subr.bf16.mxu1 %v2891_v52 }
 0x2ed   : > { %2733 = vmatpush3.bf16.msra.mxu1 %v2732_v14 }
 0x2ee   : > { %2734 = vmatprep.subr.bf16.mxu1 %v2891_v52 }
 0x2f0   : > { %2491 = vmatmul.mubr.msk.f32.vlgmr.msra.gmra.mrb[2].mxu1 %vm386_vm1, %v1535_v18 }
 0x2f1   : > { %2736 = vmatpush3.bf16.msra.mxu1 %v2735_v17  ;;  %2509 = vmatprep.mubr.msk.f32.mxu1 %vm2894_vm4, %v2895_v38 }
 0x2f2   : > { %2737 = vmatprep.subr.bf16.mxu1 %v2891_v52 }
 0x2f5   : > { %2739 = vmatpush3.bf16.msra.mxu1 %v2738_v21 }
 0x2f6   : > { %2740 = vmatprep.subr.bf16.mxu1 %v2891_v52 }
 0x2f9   : > { %2742 = vmatpush3.bf16.msra.mxu1 %v2741_v24 }
 0x2fa   : > { %2743 = vmatprep.subr.bf16.mxu1 %v2891_v52 }
 0x2fd   : > { %2745 = vmatpush3.bf16.msra.mxu1 %v2744_v28 }
 0x2fe   : > { %2746 = vmatprep.subr.bf16.mxu1 %v2891_v52 }
 0x300   : > { %2510 = vmatmul.mubr.msk.f32.vlgmr.msra.gmra.mrb[2].mxu1 %vm386_vm1, %v1618_v32 }
 0x301   : > { %2748 = vmatpush3.bf16.msra.mxu1 %v2747_v31  ;;  %2528 = vmatprep.mubr.msk.f32.mxu1 %vm2894_vm4, %v2895_v38  ;;  %v2052_v38 = vld [vmem:[%s3653_s5 + $0x1f0] sm:$0xff] }
 0x302   : > { %2749 = vmatprep.subr.bf16.mxu1 %v2891_v52  ;;  %v2756_v44 = vpack.c.bf16 %v2053_v43, %v2052_v38 }
 0x305   : > { %2751 = vmatpush3.bf16.msra.mxu1 %v2750_v35 }
 0x306   : > { %2752 = vmatprep.subr.bf16.mxu1 %v2891_v52 }
 0x309   : > { %2754 = vmatpush3.bf16.msra.mxu1 %v2753_v42 }
 0x30a   : > { %2755 = vmatprep.subr.bf16.mxu1 %v2891_v52  ;;  %v1111_v52 = vld [vmem:[%s3654_s6] sm:$0x1] }
 0x30d   : > { %2757 = vmatpush3.bf16.msra.mxu1 %v2756_v44 }
 0x310   : > { %2529 = vmatmul.mubr.msk.f32.vlgmr.msra.gmra.mrb[2].mxu1 %vm386_vm1, %v1701_v45  ;;  %vm1858_vm1 = vcmask 73728  }
 0x381   : > { %v1189_v49 = vpop.f32.mrb[6].mxu0 }
 0x382   : > { %v2397_v50 = vpop.f32.mrb[7].mxu0  ;;  %v1193_v26 = vadd.f32 %v1189_v49, %v1111_v52 }
 0x3e3   : > { %v1770_v51 = vpop.f32.mrb[2].mxu1 }
 0x3e4   : > { %v2765_v54 = vadd.f32 %v1770_v51, %v1193_v26  ;;  %v2530_v55 = vpop.f32.mrb[3].mxu1 }
 0x3e6   : > { %vm1775_vm15 = vcmp.gt.f32.partialorder %v2765_v54, 0.0  ;;  %v1777_v56 = vmul.f32 %v2765_v54, %v1776_v53 }
 0x3e8   : > { %v1778_v57 = vsel %vm1775_vm15, %v2765_v54, %v1777_v56 }
 0x3e9   : > { %2540 = vmatmul.mubr.msk.f32.vlgmr.msra.gmra.mrb[8].mxu0 %vm1784_vm0, %v1778_v57 }
 0x4bc   : > { %v1854_v59 = vpop.f32.mrb[8].mxu0 }
 0x4bd   : > { %v1855_v60 = vadd.f32 %v1854_v59, %v1783_v58  ;;  %v2541_v61 = vpop.f32.mrb[9].mxu0 }
 0x4bf   : > { %1859 = vst.msk [vmem:[%s351_s27] sm:$0x1] %vm1858_vm1, %v1855_v60 }
 0x4c0   : > { %2840 = shalt.err (!%p2837_p3)
}
 0x4c1   : > { %s2841_s21 = scalar_lea.hbm %s3606_s12, 16  ;;  %s2845_s30 = scalar_lea.hbm %s3658_s10, 32 }
 0x4c2   : > { %p2842_p4 = scmp.ne.s32.totalorder %s3606_s12, %s2841_s21  ;;  %p2846_p9 = scmp.lt.u32.totalorder %s3606_s12, %s3658_s10 }
 0x4c3   : > { %p2847_p10 = scmp.lt.u32.totalorder %s2845_s30, %s2841_s21  ;;  %p2849_p12 = scmp.lt.u32.totalorder %s2841_s21, %s3606_s12 }
 0x4c4   : > { %p2843_p7 = pnand %p2842_p4, %p2990_p5 }
 0x4c5   : > { %p2848_p11 = por %p2847_p10, %p2846_p9 }
 0x4c6   : > { %p2844_p8 = pneg %p2843_p7 }
 0x4c7   : > { %p2850_p13 = por %p2849_p12, %p2848_p11 }
 0x4c9   : > { %p2851_p0 = pnand %p2850_p13, %p2844_p8 }
 0x4cb   : > { %2854 = shalt.err (!%p2851_p0)
}
 0x4cc   : > { %2783 = dma.vmem_to_hbm [thread:$0]  (%p2990_p5), %s3608_s29, 16, %s3606_s12, %s1861_s18  }
 0x4cd PF: > { %p2789_p1 = scmp.ge.s32.totalorder %s2889_s16, 2  ;;  %s1885_s20 = sand.u32 1, %s2877_s13  }
 0x4ce   : > { %s1886_s25 = scalar_lea.sflag [#allocation3], %s1885_s20 }
 0x4cf   : > { %p2786_p2 = pnand %p2789_p1, %p2994_p6 }
 0x4d1   : > { %2872 = dma.done.wait (!%p2786_p2), %s1886_s25, 16  }
 0x4d2   : > { %2874 = vsyncadd (!%p2786_p2), %s1886_s25, 4294967280  ;;  %p20_p3 = scmp.ge.s32.totalorder %s2977_s19, 4   ;;  %s3661_s13 = smov %s2881_s14 }
 0x4d3   : > { %s3662_s14 = smov %s2885_s15  ;;  %s3663_s15 = smov %s2988_s22 }
 0x4d4   : > { %s3664_s16 = smov %s2977_s19  ;;  %22 = sbr.rel (!%p20_p3) target bundleno = 3 (0x3), region = 106 }
 0x4db   :  { %1890 = vsyncpa [#allocation3], 1 }
 0x4dc   :  { %1892 = vsyncpa [#allocation3 + $0x1], 1 }

</bundles_post_ra>
